<compile_context>
chip_gen: v6e
topology: v6e:2x2x1
jax: 0.10.0
libtpu: 0.0.40
codegen_flags: <defaults>
</compile_context>

<pallas_src>
import math

import jax
import jax.numpy as jnp
from jax import lax
from jax.experimental import pallas as pl
from jax.experimental.pallas import tpu as pltpu

# ----------------------------- configuration --------------------------------
HIDDEN = 32
NUM_HEADS = 4
HEAD_DIM = HIDDEN // NUM_HEADS
FFN_DIM = 64
NUM_CLASSES = 16
NUM_LAYERS = 2
LN_EPS = 1e-5


# ------------------------------ fused kernel ---------------------------------
def _layer_norm(x, g, b):
    mu = jnp.mean(x, axis=-1, keepdims=True)
    xc = x - mu
    var = jnp.mean(xc * xc, axis=-1, keepdims=True)
    return xc * lax.rsqrt(var + LN_EPS) * g + b


def _make_fused_kernel(n_run, score_layers):
    """Whole-forward kernel: pos-MLP + bbox dists + n_run decoder layers + score head(s).

    One grid step = one batch element; every intermediate stays VMEM-resident."""
    score_layers = tuple(score_layers)

    def kernel(embed_ref, bbox_ref,
               pw1_ref, pb1_ref, pw2_ref, pb2_ref,
               wqk_ref, bqk_ref, wv_ref, bv_ref, wo_ref, bo_ref, tau_ref,
               ln1g_ref, ln1b_ref, wf1_ref, bf1_ref, wf2_ref, bf2_ref,
               ln2g_ref, ln2b_ref, sw_ref, sb_ref,
               cls_ref):
        x = embed_ref[0]                      # (N, D)
        bb = bbox_ref[0]                      # (N, 4)
        N, D = x.shape

        # ---- positional MLP (computed once per batch element, stays in VMEM) ----
        hmid = jnp.maximum(
            jnp.dot(bb, pw1_ref[...], preferred_element_type=jnp.float32)
            + pb1_ref[...], 0.0)
        pos = (jnp.dot(hmid, pw2_ref[...], preferred_element_type=jnp.float32)
               + pb2_ref[...])                # (N, D)

        # ---- pairwise-centre distance bias (calc_bbox_dists, computed once) ----
        cx = bb[:, 0:1]
        cy = bb[:, 1:2]
        dx = cx - jnp.transpose(cx)
        dy = cy - jnp.transpose(cy)
        dist = -jnp.sqrt(dx * dx + dy * dy)   # (N, N)

        out_slot = 0
        for l in range(n_run):                # static unroll over decoder layers
            qk_in = x + pos
            # fused Q/K projection; wq / bq pre-scaled by 1/sqrt(HEAD_DIM) at setup.
            qk = (jnp.dot(qk_in, wqk_ref[l], preferred_element_type=jnp.float32)
                  + bqk_ref[l])               # (N, 2D)
            v = (jnp.dot(x, wv_ref[l], preferred_element_type=jnp.float32)
                 + bv_ref[l])                 # (N, D)
            tau_l = tau_ref[l]                # (1, H)

            # All-head logits stacked on the sublane axis -> one softmax pass.
            blocks = []
            for h in range(NUM_HEADS):
                lo = h * HEAD_DIM
                hi = lo + HEAD_DIM
                lg = lax.dot_general(qk[:, lo:hi], qk[:, D + lo:D + hi],
                                     (((1,), (1,)), ((), ())),
                                     preferred_element_type=jnp.float32)   # (N, N)
                blocks.append(lg + dist * tau_l[0:1, h:h + 1])
            logits = jnp.concatenate(blocks, axis=0)          # (H*N, N)
            m = jnp.max(logits, axis=-1, keepdims=True)
            p = jnp.exp(logits - m)
            p = p * pl.reciprocal(jnp.sum(p, axis=-1, keepdims=True), approx=True)

            # Per-head PV, then concat heads -> single output projection matmul.
            heads = []
            for h in range(NUM_HEADS):
                lo = h * HEAD_DIM
                hi = lo + HEAD_DIM
                heads.append(jnp.dot(p[h * N:(h + 1) * N, :], v[:, lo:hi],
                                     preferred_element_type=jnp.float32))   # (N, hd)
            attn = (jnp.dot(jnp.concatenate(heads, axis=1), wo_ref[l],
                            preferred_element_type=jnp.float32) + bo_ref[l])

            y = _layer_norm(x + attn, ln1g_ref[l], ln1b_ref[l])
            f = jnp.maximum(
                jnp.dot(y, wf1_ref[l], preferred_element_type=jnp.float32)
                + bf1_ref[l], 0.0)
            f = (jnp.dot(f, wf2_ref[l], preferred_element_type=jnp.float32)
                 + bf2_ref[l])
            x = _layer_norm(y + f, ln2g_ref[l], ln2b_ref[l])

            if l in score_layers:
                cls = (jnp.dot(x, sw_ref[out_slot],
                               preferred_element_type=jnp.float32)
                       + sb_ref[out_slot])
                cls_ref[out_slot, 0, :, :] = cls
                out_slot += 1

    return kernel


def fused_decoder_forward(embed, refer_bbox, pos_params, layer_stack, score_stack,
                          n_run, score_layers):
    B, N, D = embed.shape
    n_out = len(score_layers)
    C = score_stack[0].shape[-1]

    kernel = _make_fused_kernel(n_run, score_layers)

    def batch_spec(shape):
        nd = len(shape)
        return pl.BlockSpec((1,) + tuple(shape),
                            lambda b, _nd=nd: (b,) + (0,) * _nd)

    def full_spec(a):
        shp = tuple(a.shape)
        return pl.BlockSpec(shp, lambda b, _n=len(shp): (0,) * _n)

    params = (pos_params["w1"], pos_params["b1"], pos_params["w2"], pos_params["b2"],
              *layer_stack, *score_stack)

    return pl.pallas_call(
        kernel,
        out_shape=jax.ShapeDtypeStruct((n_out, B, N, C), jnp.float32),
        grid=(B,),
        in_specs=[batch_spec((N, D)), batch_spec((N, 4))]
                 + [full_spec(a) for a in params],
        out_specs=pl.BlockSpec((n_out, 1, N, C), lambda b: (0, b, 0, 0)),
        compiler_params=pltpu.CompilerParams(dimension_semantics=("parallel",)),
    )(embed, refer_bbox, *params)


# --------------------------- parameter construction ---------------------------
def _xavier(key, shape):
    limit = math.sqrt(6.0 / (shape[0] + shape[1]))
    return jax.random.uniform(key, shape, jnp.float32, -limit, limit)


def _small(key, shape):
    return jax.random.uniform(key, shape, jnp.float32, -0.05, 0.05)


_LAYER_STACK_ORDER = ("wqk", "bqk", "wv", "bv", "wo", "bo", "tau",
                      "ln1g", "ln1b", "wf1", "bf1", "wf2", "bf2", "ln2g", "ln2b")


class ScaleAdaptiveTransformerDecoderPallas:
    """JAX/Pallas port of ScaleAdaptiveTransformerDecoder (forward semantics)."""

    def __init__(self, hidden_dim, num_layers, eval_idx=-1, *, key):
        self.hidden_dim = hidden_dim
        self.num_layers = num_layers
        self.eval_idx = eval_idx if eval_idx >= 0 else num_layers + eval_idx

        keys = iter(jax.random.split(key, 8 + 16 * num_layers))

        self.pos_mlp_params = {
            "w1": _xavier(next(keys), (4, 2 * hidden_dim)),
            "b1": _small(next(keys), (1, 2 * hidden_dim)),
            "w2": _xavier(next(keys), (2 * hidden_dim, hidden_dim)),
            "b2": _small(next(keys), (1, hidden_dim)),
        }

        self.layer_params = []
        self.score_params = []
        for i in range(num_layers):
            lp = {
                "wq": _xavier(next(keys), (hidden_dim, hidden_dim)),
                "bq": _small(next(keys), (1, hidden_dim)),
                "wk": _xavier(next(keys), (hidden_dim, hidden_dim)),
                "bk": _small(next(keys), (1, hidden_dim)),
                "wv": _xavier(next(keys), (hidden_dim, hidden_dim)),
                "bv": _small(next(keys), (1, hidden_dim)),
                "wo": _xavier(next(keys), (hidden_dim, hidden_dim)),
                "bo": _small(next(keys), (1, hidden_dim)),
                "tau": jnp.linspace(0.5, 1.5, NUM_HEADS,
                                    dtype=jnp.float32).reshape(1, NUM_HEADS),
                "ln1g": jnp.ones((1, hidden_dim), jnp.float32),
                "ln1b": jnp.zeros((1, hidden_dim), jnp.float32),
                "wf1": _xavier(next(keys), (hidden_dim, FFN_DIM)),
                "bf1": _small(next(keys), (1, FFN_DIM)),
                "wf2": _xavier(next(keys), (FFN_DIM, hidden_dim)),
                "bf2": _small(next(keys), (1, hidden_dim)),
                "ln2g": jnp.ones((1, hidden_dim), jnp.float32),
                "ln2b": jnp.zeros((1, hidden_dim), jnp.float32),
            }
            self.layer_params.append(lp)
            self.score_params.append({
                "w": _xavier(next(keys), (hidden_dim, NUM_CLASSES)),
                "b": _small(next(keys), (1, NUM_CLASSES)),
            })

        self._build_fused_stacks()

    def _build_fused_stacks(self):
        scale = 1.0 / math.sqrt(HEAD_DIM)
        fused = {k: [] for k in _LAYER_STACK_ORDER}
        for lp in self.layer_params:
            # fold the 1/sqrt(head_dim) scale into wq/bq; fuse Q and K projections.
            fused["wqk"].append(jnp.concatenate([lp["wq"] * scale, lp["wk"]], axis=1))
            fused["bqk"].append(jnp.concatenate([lp["bq"] * scale, lp["bk"]], axis=1))
            for k in ("wv", "bv", "wo", "bo", "tau", "ln1g", "ln1b",
                      "wf1", "bf1", "wf2", "bf2", "ln2g", "ln2b"):
                fused[k].append(lp[k])
        self._layer_stack = tuple(jnp.stack(fused[k]) for k in _LAYER_STACK_ORDER)
        self._score_w_stack = jnp.stack([sp["w"] for sp in self.score_params])
        self._score_b_stack = jnp.stack([sp["b"] for sp in self.score_params])

    def __call__(self, embed, refer_bbox, attn_mask=None, padding_mask=None,
                 training=False):
        # attn_mask / padding_mask are None in this synthetic setup (matching the
        # `None` defaults of the PyTorch forward; the representative layer ignores them).
        if training:
            n_run = self.num_layers
            score_layers = tuple(range(self.num_layers))
            sw, sb = self._score_w_stack, self._score_b_stack
        else:
            n_run = self.eval_idx + 1
            score_layers = (self.eval_idx,)
            sw = self._score_w_stack[self.eval_idx:self.eval_idx + 1]
            sb = self._score_b_stack[self.eval_idx:self.eval_idx + 1]
        layer_stack = (self._layer_stack if n_run == self.num_layers
                       else tuple(a[:n_run] for a in self._layer_stack))
        return fused_decoder_forward(embed, refer_bbox, self.pos_mlp_params,
                                     layer_stack, (sw, sb), n_run, score_layers)


# ------------------------------ pure-JAX reference ----------------------------
def _reference_forward(decoder, embed, refer_bbox, training=False):
    with jax.default_matmul_precision("highest"):
        p = decoder.pos_mlp_params
        pos = jnp.maximum(refer_bbox @ p["w1"] + p["b1"], 0.0) @ p["w2"] + p["b2"]

        centers = refer_bbox[..., :2]
        diff = centers[:, :, None, :] - centers[:, None, :, :]
        dist = -jnp.sqrt(jnp.sum(diff * diff, axis=-1))

        def ln(x, g, b):
            mu = jnp.mean(x, axis=-1, keepdims=True)
            var = jnp.mean((x - mu) ** 2, axis=-1, keepdims=True)
            return (x - mu) / jnp.sqrt(var + LN_EPS) * g + b

        n_run = decoder.num_layers if training else decoder.eval_idx + 1
        out = embed
        cls_list = []
        for i in range(n_run):
            lp = decoder.layer_params[i]
            qk = out + pos
            q = qk @ lp["wq"] + lp["bq"]
            k = qk @ lp["wk"] + lp["bk"]
            v = out @ lp["wv"] + lp["bv"]
            attn = jnp.zeros_like(out)
            for h in range(NUM_HEADS):
                lo, hi = h * HEAD_DIM, (h + 1) * HEAD_DIM
                logits = jnp.einsum("bnd,bmd->bnm", q[..., lo:hi],
                                    k[..., lo:hi]) / math.sqrt(HEAD_DIM)
                logits = logits + dist * lp["tau"][0, h]
                pr = jax.nn.softmax(logits, axis=-1)
                head = jnp.einsum("bnm,bmd->bnd", pr, v[..., lo:hi])
                attn = attn + head @ lp["wo"][lo:hi, :]
            attn = attn + lp["bo"]
            y = ln(out + attn, lp["ln1g"], lp["ln1b"])
            f = jnp.maximum(y @ lp["wf1"] + lp["bf1"], 0.0) @ lp["wf2"] + lp["bf2"]
            out = ln(y + f, lp["ln2g"], lp["ln2b"])
            if training or i == decoder.eval_idx:
                sp = decoder.score_params[i]
                cls_list.append(out @ sp["w"] + sp["b"])
        return jnp.stack(cls_list)


# ------------------------------------ main ------------------------------------
if __name__ == "__main__":
    key = jax.random.PRNGKey(0)
    k_param, k_embed, k_bbox = jax.random.split(key, 3)

    B, N = 2, 8
    decoder = ScaleAdaptiveTransformerDecoderPallas(
        HIDDEN, NUM_LAYERS, eval_idx=-1, key=k_param)

    embed = jax.random.normal(k_embed, (B, N, HIDDEN), jnp.float32)
    refer_bbox = jax.random.uniform(k_bbox, (B, N, 4), jnp.float32)

    # ---- eval path (single score head at eval_idx) ----
    out_eval = jax.block_until_ready(decoder(embed, refer_bbox))
    assert out_eval.shape == (1, B, N, NUM_CLASSES), out_eval.shape
    ref_eval = jax.block_until_ready(_reference_forward(decoder, embed, refer_bbox))
    assert jnp.allclose(out_eval, ref_eval, atol=5e-3, rtol=5e-3), (
        float(jnp.max(jnp.abs(out_eval - ref_eval))))

    # ---- training path (score head applied after every layer) ----
    out_tr = jax.block_until_ready(decoder(embed, refer_bbox, training=True))
    assert out_tr.shape == (NUM_LAYERS, B, N, NUM_CLASSES), out_tr.shape
    ref_tr = jax.block_until_ready(
        _reference_forward(decoder, embed, refer_bbox, training=True))
    assert jnp.allclose(out_tr, ref_tr, atol=5e-3, rtol=5e-3), (
        float(jnp.max(jnp.abs(out_tr - ref_tr))))

    print("KERNEL_OK")
</pallas_src>

<mosaic_0001>
module attributes {stable_mosaic.version = 11 : i64} {
  func.func @kernel(%arg0: i32, %arg1: memref<1x8x32xf32, #tpu.memory_space<vmem>>, %arg2: memref<1x8x4xf32, #tpu.memory_space<vmem>>, %arg3: memref<4x64xf32, #tpu.memory_space<vmem>>, %arg4: memref<1x64xf32, #tpu.memory_space<vmem>>, %arg5: memref<64x32xf32, #tpu.memory_space<vmem>>, %arg6: memref<1x32xf32, #tpu.memory_space<vmem>>, %arg7: memref<2x32x64xf32, #tpu.memory_space<vmem>>, %arg8: memref<2x1x64xf32, #tpu.memory_space<vmem>>, %arg9: memref<2x32x32xf32, #tpu.memory_space<vmem>>, %arg10: memref<2x1x32xf32, #tpu.memory_space<vmem>>, %arg11: memref<2x32x32xf32, #tpu.memory_space<vmem>>, %arg12: memref<2x1x32xf32, #tpu.memory_space<vmem>>, %arg13: memref<2x1x4xf32, #tpu.memory_space<vmem>>, %arg14: memref<2x1x32xf32, #tpu.memory_space<vmem>>, %arg15: memref<2x1x32xf32, #tpu.memory_space<vmem>>, %arg16: memref<2x32x64xf32, #tpu.memory_space<vmem>>, %arg17: memref<2x1x64xf32, #tpu.memory_space<vmem>>, %arg18: memref<2x64x32xf32, #tpu.memory_space<vmem>>, %arg19: memref<2x1x32xf32, #tpu.memory_space<vmem>>, %arg20: memref<2x1x32xf32, #tpu.memory_space<vmem>>, %arg21: memref<2x1x32xf32, #tpu.memory_space<vmem>>, %arg22: memref<1x32x16xf32, #tpu.memory_space<vmem>>, %arg23: memref<1x1x16xf32, #tpu.memory_space<vmem>>, %arg24: memref<1x1x8x16xf32, #tpu.memory_space<vmem>>) attributes {dimension_semantics = [#tpu.dimension_semantics<parallel>], iteration_bounds = array<i64: 2>, scalar_prefetch = 0 : i64, scratch_operands = 0 : i64, tpu.core_type = #tpu.core_type<tc>, window_params = [{transform_indices = @transform_0, window_bounds = array<i64: 1, 8, 32>}, {transform_indices = @transform_1, window_bounds = array<i64: 1, 8, 4>}, {pipeline_mode = #tpu.pipeline_mode<synchronous>, transform_indices = @transform_2, window_bounds = array<i64: 4, 64>}, {pipeline_mode = #tpu.pipeline_mode<synchronous>, transform_indices = @transform_3, window_bounds = array<i64: 1, 64>}, {pipeline_mode = #tpu.pipeline_mode<synchronous>, transform_indices = @transform_4, window_bounds = array<i64: 64, 32>}, {pipeline_mode = #tpu.pipeline_mode<synchronous>, transform_indices = @transform_5, window_bounds = array<i64: 1, 32>}, {pipeline_mode = #tpu.pipeline_mode<synchronous>, transform_indices = @transform_6, window_bounds = array<i64: 2, 32, 64>}, {pipeline_mode = #tpu.pipeline_mode<synchronous>, transform_indices = @transform_7, window_bounds = array<i64: 2, 1, 64>}, {pipeline_mode = #tpu.pipeline_mode<synchronous>, transform_indices = @transform_8, window_bounds = array<i64: 2, 32, 32>}, {pipeline_mode = #tpu.pipeline_mode<synchronous>, transform_indices = @transform_9, window_bounds = array<i64: 2, 1, 32>}, {pipeline_mode = #tpu.pipeline_mode<synchronous>, transform_indices = @transform_10, window_bounds = array<i64: 2, 32, 32>}, {pipeline_mode = #tpu.pipeline_mode<synchronous>, transform_indices = @transform_11, window_bounds = array<i64: 2, 1, 32>}, {pipeline_mode = #tpu.pipeline_mode<synchronous>, transform_indices = @transform_12, window_bounds = array<i64: 2, 1, 4>}, {pipeline_mode = #tpu.pipeline_mode<synchronous>, transform_indices = @transform_13, window_bounds = array<i64: 2, 1, 32>}, {pipeline_mode = #tpu.pipeline_mode<synchronous>, transform_indices = @transform_14, window_bounds = array<i64: 2, 1, 32>}, {pipeline_mode = #tpu.pipeline_mode<synchronous>, transform_indices = @transform_15, window_bounds = array<i64: 2, 32, 64>}, {pipeline_mode = #tpu.pipeline_mode<synchronous>, transform_indices = @transform_16, window_bounds = array<i64: 2, 1, 64>}, {pipeline_mode = #tpu.pipeline_mode<synchronous>, transform_indices = @transform_17, window_bounds = array<i64: 2, 64, 32>}, {pipeline_mode = #tpu.pipeline_mode<synchronous>, transform_indices = @transform_18, window_bounds = array<i64: 2, 1, 32>}, {pipeline_mode = #tpu.pipeline_mode<synchronous>, transform_indices = @transform_19, window_bounds = array<i64: 2, 1, 32>}, {pipeline_mode = #tpu.pipeline_mode<synchronous>, transform_indices = @transform_20, window_bounds = array<i64: 2, 1, 32>}, {pipeline_mode = #tpu.pipeline_mode<synchronous>, transform_indices = @transform_21, window_bounds = array<i64: 1, 32, 16>}, {pipeline_mode = #tpu.pipeline_mode<synchronous>, transform_indices = @transform_22, window_bounds = array<i64: 1, 1, 16>}, {transform_indices = @transform_23, window_bounds = array<i64: 1, 1, 8, 16>}]} {
    %c0 = arith.constant 0 : index
    %c0_0 = arith.constant 0 : index
    %c0_1 = arith.constant 0 : index
    %0 = vector.load %arg1[%c0, %c0_0, %c0_1] : memref<1x8x32xf32, #tpu.memory_space<vmem>>, vector<1x8x32xf32>
    %1 = vector.shape_cast %0 : vector<1x8x32xf32> to vector<8x32xf32>
    %c0_2 = arith.constant 0 : index
    %c0_3 = arith.constant 0 : index
    %c0_4 = arith.constant 0 : index
    %2 = vector.load %arg2[%c0_2, %c0_3, %c0_4] : memref<1x8x4xf32, #tpu.memory_space<vmem>>, vector<1x8x4xf32>
    %3 = vector.shape_cast %2 : vector<1x8x4xf32> to vector<8x4xf32>
    %c0_5 = arith.constant 0 : index
    %c0_6 = arith.constant 0 : index
    %4 = vector.load %arg3[%c0_5, %c0_6] : memref<4x64xf32, #tpu.memory_space<vmem>>, vector<4x64xf32>
    %cst = arith.constant dense<0.000000e+00> : vector<8x64xf32>
    %5 = tpu.matmul %3, %4, %cst {dimension_numbers = #tpu.dot_dimension_numbers<[1], [0], [0], [1], [0, 0, 1, 1], [], []>} : vector<8x4xf32>, vector<4x64xf32>, vector<8x64xf32> -> vector<8x64xf32>
    %c0_7 = arith.constant 0 : index
    %c0_8 = arith.constant 0 : index
    %6 = vector.load %arg4[%c0_7, %c0_8] : memref<1x64xf32, #tpu.memory_space<vmem>>, vector<1x64xf32>
    %7 = vector.broadcast %6 : vector<1x64xf32> to vector<8x64xf32>
    %8 = arith.addf %5, %7 : vector<8x64xf32>
    %cst_9 = arith.constant 0.000000e+00 : f32
    %9 = vector.broadcast %cst_9 : f32 to vector<8x64xf32>
    %10 = arith.maximumf %8, %9 : vector<8x64xf32>
    %c0_10 = arith.constant 0 : index
    %c0_11 = arith.constant 0 : index
    %11 = vector.load %arg5[%c0_10, %c0_11] : memref<64x32xf32, #tpu.memory_space<vmem>>, vector<64x32xf32>
    %cst_12 = arith.constant dense<0.000000e+00> : vector<8x32xf32>
    %12 = tpu.matmul %10, %11, %cst_12 {dimension_numbers = #tpu.dot_dimension_numbers<[1], [0], [0], [1], [0, 0, 1, 1], [], []>} : vector<8x64xf32>, vector<64x32xf32>, vector<8x32xf32> -> vector<8x32xf32>
    %c0_13 = arith.constant 0 : index
    %c0_14 = arith.constant 0 : index
    %13 = vector.load %arg6[%c0_13, %c0_14] : memref<1x32xf32, #tpu.memory_space<vmem>>, vector<1x32xf32>
    %14 = vector.broadcast %13 : vector<1x32xf32> to vector<8x32xf32>
    %15 = arith.addf %12, %14 : vector<8x32xf32>
    %16 = vector.extract_strided_slice %3 {offsets = [0, 0], sizes = [8, 1], strides = [1, 1]} : vector<8x4xf32> to vector<8x1xf32>
    %17 = vector.extract_strided_slice %3 {offsets = [0, 1], sizes = [8, 1], strides = [1, 1]} : vector<8x4xf32> to vector<8x1xf32>
    %18 = tpu.transpose %16, [1, 0] : vector<8x1xf32> -> vector<1x8xf32>
    %19 = vector.broadcast %16 : vector<8x1xf32> to vector<8x8xf32>
    %20 = vector.broadcast %18 : vector<1x8xf32> to vector<8x8xf32>
    %21 = arith.subf %19, %20 : vector<8x8xf32>
    %22 = tpu.transpose %17, [1, 0] : vector<8x1xf32> -> vector<1x8xf32>
    %23 = vector.broadcast %17 : vector<8x1xf32> to vector<8x8xf32>
    %24 = vector.broadcast %22 : vector<1x8xf32> to vector<8x8xf32>
    %25 = arith.subf %23, %24 : vector<8x8xf32>
    %26 = arith.mulf %21, %21 : vector<8x8xf32>
    %27 = arith.mulf %25, %25 : vector<8x8xf32>
    %28 = arith.addf %26, %27 : vector<8x8xf32>
    %29 = math.sqrt %28 : vector<8x8xf32>
    %cst_15 = arith.constant 0.000000e+00 : f32
    %30 = vector.broadcast %cst_15 : f32 to vector<8x8xf32>
    %31 = arith.subf %30, %29 : vector<8x8xf32>
    %32 = arith.addf %1, %15 : vector<8x32xf32>
    %c0_16 = arith.constant 0 : index
    %c0_17 = arith.constant 0 : index
    %c0_18 = arith.constant 0 : index
    %33 = vector.load %arg7[%c0_16, %c0_17, %c0_18] : memref<2x32x64xf32, #tpu.memory_space<vmem>>, vector<1x32x64xf32>
    %34 = vector.shape_cast %33 : vector<1x32x64xf32> to vector<32x64xf32>
    %cst_19 = arith.constant dense<0.000000e+00> : vector<8x64xf32>
    %35 = tpu.matmul %32, %34, %cst_19 {dimension_numbers = #tpu.dot_dimension_numbers<[1], [0], [0], [1], [0, 0, 1, 1], [], []>} : vector<8x32xf32>, vector<32x64xf32>, vector<8x64xf32> -> vector<8x64xf32>
    %c0_20 = arith.constant 0 : index
    %c0_21 = arith.constant 0 : index
    %c0_22 = arith.constant 0 : index
    %36 = vector.load %arg8[%c0_20, %c0_21, %c0_22] : memref<2x1x64xf32, #tpu.memory_space<vmem>>, vector<1x1x64xf32>
    %37 = vector.shape_cast %36 : vector<1x1x64xf32> to vector<1x64xf32>
    %38 = vector.broadcast %37 : vector<1x64xf32> to vector<8x64xf32>
    %39 = arith.addf %35, %38 : vector<8x64xf32>
    %c0_23 = arith.constant 0 : index
    %c0_24 = arith.constant 0 : index
    %c0_25 = arith.constant 0 : index
    %40 = vector.load %arg9[%c0_23, %c0_24, %c0_25] : memref<2x32x32xf32, #tpu.memory_space<vmem>>, vector<1x32x32xf32>
    %41 = vector.shape_cast %40 : vector<1x32x32xf32> to vector<32x32xf32>
    %cst_26 = arith.constant dense<0.000000e+00> : vector<8x32xf32>
    %42 = tpu.matmul %1, %41, %cst_26 {dimension_numbers = #tpu.dot_dimension_numbers<[1], [0], [0], [1], [0, 0, 1, 1], [], []>} : vector<8x32xf32>, vector<32x32xf32>, vector<8x32xf32> -> vector<8x32xf32>
    %c0_27 = arith.constant 0 : index
    %c0_28 = arith.constant 0 : index
    %c0_29 = arith.constant 0 : index
    %43 = vector.load %arg10[%c0_27, %c0_28, %c0_29] : memref<2x1x32xf32, #tpu.memory_space<vmem>>, vector<1x1x32xf32>
    %44 = vector.shape_cast %43 : vector<1x1x32xf32> to vector<1x32xf32>
    %45 = vector.broadcast %44 : vector<1x32xf32> to vector<8x32xf32>
    %46 = arith.addf %42, %45 : vector<8x32xf32>
    %c0_30 = arith.constant 0 : index
    %c0_31 = arith.constant 0 : index
    %c0_32 = arith.constant 0 : index
    %47 = vector.load %arg13[%c0_30, %c0_31, %c0_32] : memref<2x1x4xf32, #tpu.memory_space<vmem>>, vector<1x1x4xf32>
    %48 = vector.shape_cast %47 : vector<1x1x4xf32> to vector<1x4xf32>
    %49 = vector.extract_strided_slice %39 {offsets = [0, 0], sizes = [8, 8], strides = [1, 1]} : vector<8x64xf32> to vector<8x8xf32>
    %50 = vector.extract_strided_slice %39 {offsets = [0, 32], sizes = [8, 8], strides = [1, 1]} : vector<8x64xf32> to vector<8x8xf32>
    %cst_33 = arith.constant dense<0.000000e+00> : vector<8x8xf32>
    %51 = tpu.matmul %49, %50, %cst_33 {dimension_numbers = #tpu.dot_dimension_numbers<[1], [1], [0], [0], [0, 0, 1, 0], [], []>} : vector<8x8xf32>, vector<8x8xf32>, vector<8x8xf32> -> vector<8x8xf32>
    %52 = vector.extract_strided_slice %48 {offsets = [0, 0], sizes = [1, 1], strides = [1, 1]} : vector<1x4xf32> to vector<1x1xf32>
    %53 = vector.broadcast %52 : vector<1x1xf32> to vector<8x8xf32>
    %54 = arith.mulf %31, %53 : vector<8x8xf32>
    %55 = arith.addf %51, %54 : vector<8x8xf32>
    %56 = vector.extract_strided_slice %39 {offsets = [0, 8], sizes = [8, 8], strides = [1, 1]} : vector<8x64xf32> to vector<8x8xf32>
    %57 = vector.extract_strided_slice %39 {offsets = [0, 40], sizes = [8, 8], strides = [1, 1]} : vector<8x64xf32> to vector<8x8xf32>
    %cst_34 = arith.constant dense<0.000000e+00> : vector<8x8xf32>
    %58 = tpu.matmul %56, %57, %cst_34 {dimension_numbers = #tpu.dot_dimension_numbers<[1], [1], [0], [0], [0, 0, 1, 0], [], []>} : vector<8x8xf32>, vector<8x8xf32>, vector<8x8xf32> -> vector<8x8xf32>
    %59 = vector.extract_strided_slice %48 {offsets = [0, 1], sizes = [1, 1], strides = [1, 1]} : vector<1x4xf32> to vector<1x1xf32>
    %60 = vector.broadcast %59 : vector<1x1xf32> to vector<8x8xf32>
    %61 = arith.mulf %31, %60 : vector<8x8xf32>
    %62 = arith.addf %58, %61 : vector<8x8xf32>
    %63 = vector.extract_strided_slice %39 {offsets = [0, 16], sizes = [8, 8], strides = [1, 1]} : vector<8x64xf32> to vector<8x8xf32>
    %64 = vector.extract_strided_slice %39 {offsets = [0, 48], sizes = [8, 8], strides = [1, 1]} : vector<8x64xf32> to vector<8x8xf32>
    %cst_35 = arith.constant dense<0.000000e+00> : vector<8x8xf32>
    %65 = tpu.matmul %63, %64, %cst_35 {dimension_numbers = #tpu.dot_dimension_numbers<[1], [1], [0], [0], [0, 0, 1, 0], [], []>} : vector<8x8xf32>, vector<8x8xf32>, vector<8x8xf32> -> vector<8x8xf32>
    %66 = vector.extract_strided_slice %48 {offsets = [0, 2], sizes = [1, 1], strides = [1, 1]} : vector<1x4xf32> to vector<1x1xf32>
    %67 = vector.broadcast %66 : vector<1x1xf32> to vector<8x8xf32>
    %68 = arith.mulf %31, %67 : vector<8x8xf32>
    %69 = arith.addf %65, %68 : vector<8x8xf32>
    %70 = vector.extract_strided_slice %39 {offsets = [0, 24], sizes = [8, 8], strides = [1, 1]} : vector<8x64xf32> to vector<8x8xf32>
    %71 = vector.extract_strided_slice %39 {offsets = [0, 56], sizes = [8, 8], strides = [1, 1]} : vector<8x64xf32> to vector<8x8xf32>
    %cst_36 = arith.constant dense<0.000000e+00> : vector<8x8xf32>
    %72 = tpu.matmul %70, %71, %cst_36 {dimension_numbers = #tpu.dot_dimension_numbers<[1], [1], [0], [0], [0, 0, 1, 0], [], []>} : vector<8x8xf32>, vector<8x8xf32>, vector<8x8xf32> -> vector<8x8xf32>
    %73 = vector.extract_strided_slice %48 {offsets = [0, 3], sizes = [1, 1], strides = [1, 1]} : vector<1x4xf32> to vector<1x1xf32>
    %74 = vector.broadcast %73 : vector<1x1xf32> to vector<8x8xf32>
    %75 = arith.mulf %31, %74 : vector<8x8xf32>
    %76 = arith.addf %72, %75 : vector<8x8xf32>
    %77 = tpu.concatenate %55, %62, %69, %76 in 0 : vector<8x8xf32>, vector<8x8xf32>, vector<8x8xf32>, vector<8x8xf32> -> vector<32x8xf32>
    %cst_37 = arith.constant dense<0xFF800000> : vector<32xf32>
    %78 = vector.multi_reduction <maximumf>, %77, %cst_37 [1] : vector<32x8xf32> to vector<32xf32>
    %79 = vector.shape_cast %78 : vector<32xf32> to vector<32x1xf32>
    %80 = vector.broadcast %79 : vector<32x1xf32> to vector<32x8xf32>
    %81 = arith.subf %77, %80 : vector<32x8xf32>
    %82 = math.exp %81 : vector<32x8xf32>
    %cst_38 = arith.constant dense<0.000000e+00> : vector<32xf32>
    %83 = vector.multi_reduction <add>, %82, %cst_38 [1] : vector<32x8xf32> to vector<32xf32>
    %84 = vector.shape_cast %83 : vector<32xf32> to vector<32x1xf32>
    %85 = tpu.reciprocal %84 {approx = true} : vector<32x1xf32> -> vector<32x1xf32>
    %86 = vector.broadcast %85 : vector<32x1xf32> to vector<32x8xf32>
    %87 = arith.mulf %82, %86 : vector<32x8xf32>
    %88 = vector.extract_strided_slice %87 {offsets = [0, 0], sizes = [8, 8], strides = [1, 1]} : vector<32x8xf32> to vector<8x8xf32>
    %89 = vector.extract_strided_slice %46 {offsets = [0, 0], sizes = [8, 8], strides = [1, 1]} : vector<8x32xf32> to vector<8x8xf32>
    %cst_39 = arith.constant dense<0.000000e+00> : vector<8x8xf32>
    %90 = tpu.matmul %88, %89, %cst_39 {dimension_numbers = #tpu.dot_dimension_numbers<[1], [0], [0], [1], [0, 0, 1, 1], [], []>} : vector<8x8xf32>, vector<8x8xf32>, vector<8x8xf32> -> vector<8x8xf32>
    %91 = vector.extract_strided_slice %87 {offsets = [8, 0], sizes = [8, 8], strides = [1, 1]} : vector<32x8xf32> to vector<8x8xf32>
    %92 = vector.extract_strided_slice %46 {offsets = [0, 8], sizes = [8, 8], strides = [1, 1]} : vector<8x32xf32> to vector<8x8xf32>
    %cst_40 = arith.constant dense<0.000000e+00> : vector<8x8xf32>
    %93 = tpu.matmul %91, %92, %cst_40 {dimension_numbers = #tpu.dot_dimension_numbers<[1], [0], [0], [1], [0, 0, 1, 1], [], []>} : vector<8x8xf32>, vector<8x8xf32>, vector<8x8xf32> -> vector<8x8xf32>
    %94 = vector.extract_strided_slice %87 {offsets = [16, 0], sizes = [8, 8], strides = [1, 1]} : vector<32x8xf32> to vector<8x8xf32>
    %95 = vector.extract_strided_slice %46 {offsets = [0, 16], sizes = [8, 8], strides = [1, 1]} : vector<8x32xf32> to vector<8x8xf32>
    %cst_41 = arith.constant dense<0.000000e+00> : vector<8x8xf32>
    %96 = tpu.matmul %94, %95, %cst_41 {dimension_numbers = #tpu.dot_dimension_numbers<[1], [0], [0], [1], [0, 0, 1, 1], [], []>} : vector<8x8xf32>, vector<8x8xf32>, vector<8x8xf32> -> vector<8x8xf32>
    %97 = vector.extract_strided_slice %87 {offsets = [24, 0], sizes = [8, 8], strides = [1, 1]} : vector<32x8xf32> to vector<8x8xf32>
    %98 = vector.extract_strided_slice %46 {offsets = [0, 24], sizes = [8, 8], strides = [1, 1]} : vector<8x32xf32> to vector<8x8xf32>
    %cst_42 = arith.constant dense<0.000000e+00> : vector<8x8xf32>
    %99 = tpu.matmul %97, %98, %cst_42 {dimension_numbers = #tpu.dot_dimension_numbers<[1], [0], [0], [1], [0, 0, 1, 1], [], []>} : vector<8x8xf32>, vector<8x8xf32>, vector<8x8xf32> -> vector<8x8xf32>
    %100 = tpu.concatenate %90, %93, %96, %99 in 1 : vector<8x8xf32>, vector<8x8xf32>, vector<8x8xf32>, vector<8x8xf32> -> vector<8x32xf32>
    %c0_43 = arith.constant 0 : index
    %c0_44 = arith.constant 0 : index
    %c0_45 = arith.constant 0 : index
    %101 = vector.load %arg11[%c0_43, %c0_44, %c0_45] : memref<2x32x32xf32, #tpu.memory_space<vmem>>, vector<1x32x32xf32>
    %102 = vector.shape_cast %101 : vector<1x32x32xf32> to vector<32x32xf32>
    %cst_46 = arith.constant dense<0.000000e+00> : vector<8x32xf32>
    %103 = tpu.matmul %100, %102, %cst_46 {dimension_numbers = #tpu.dot_dimension_numbers<[1], [0], [0], [1], [0, 0, 1, 1], [], []>} : vector<8x32xf32>, vector<32x32xf32>, vector<8x32xf32> -> vector<8x32xf32>
    %c0_47 = arith.constant 0 : index
    %c0_48 = arith.constant 0 : index
    %c0_49 = arith.constant 0 : index
    %104 = vector.load %arg12[%c0_47, %c0_48, %c0_49] : memref<2x1x32xf32, #tpu.memory_space<vmem>>, vector<1x1x32xf32>
    %105 = vector.shape_cast %104 : vector<1x1x32xf32> to vector<1x32xf32>
    %106 = vector.broadcast %105 : vector<1x32xf32> to vector<8x32xf32>
    %107 = arith.addf %103, %106 : vector<8x32xf32>
    %108 = arith.addf %1, %107 : vector<8x32xf32>
    %c0_50 = arith.constant 0 : index
    %c0_51 = arith.constant 0 : index
    %c0_52 = arith.constant 0 : index
    %109 = vector.load %arg14[%c0_50, %c0_51, %c0_52] : memref<2x1x32xf32, #tpu.memory_space<vmem>>, vector<1x1x32xf32>
    %110 = vector.shape_cast %109 : vector<1x1x32xf32> to vector<1x32xf32>
    %c0_53 = arith.constant 0 : index
    %c0_54 = arith.constant 0 : index
    %c0_55 = arith.constant 0 : index
    %111 = vector.load %arg15[%c0_53, %c0_54, %c0_55] : memref<2x1x32xf32, #tpu.memory_space<vmem>>, vector<1x1x32xf32>
    %112 = vector.shape_cast %111 : vector<1x1x32xf32> to vector<1x32xf32>
    %cst_56 = arith.constant dense<0.000000e+00> : vector<8xf32>
    %113 = vector.multi_reduction <add>, %108, %cst_56 [1] : vector<8x32xf32> to vector<8xf32>
    %114 = vector.shape_cast %113 : vector<8xf32> to vector<8x1xf32>
    %cst_57 = arith.constant 3.200000e+01 : f32
    %115 = vector.broadcast %cst_57 : f32 to vector<8x1xf32>
    %116 = arith.divf %114, %115 : vector<8x1xf32>
    %117 = vector.broadcast %116 : vector<8x1xf32> to vector<8x32xf32>
    %118 = arith.subf %108, %117 : vector<8x32xf32>
    %119 = arith.mulf %118, %118 : vector<8x32xf32>
    %cst_58 = arith.constant dense<0.000000e+00> : vector<8xf32>
    %120 = vector.multi_reduction <add>, %119, %cst_58 [1] : vector<8x32xf32> to vector<8xf32>
    %121 = vector.shape_cast %120 : vector<8xf32> to vector<8x1xf32>
    %cst_59 = arith.constant 3.200000e+01 : f32
    %122 = vector.broadcast %cst_59 : f32 to vector<8x1xf32>
    %123 = arith.divf %121, %122 : vector<8x1xf32>
    %cst_60 = arith.constant 9.99999974E-6 : f32
    %124 = vector.broadcast %cst_60 : f32 to vector<8x1xf32>
    %125 = arith.addf %123, %124 : vector<8x1xf32>
    %126 = math.rsqrt %125 : vector<8x1xf32>
    %127 = vector.broadcast %126 : vector<8x1xf32> to vector<8x32xf32>
    %128 = arith.mulf %118, %127 : vector<8x32xf32>
    %129 = vector.broadcast %110 : vector<1x32xf32> to vector<8x32xf32>
    %130 = arith.mulf %128, %129 : vector<8x32xf32>
    %131 = vector.broadcast %112 : vector<1x32xf32> to vector<8x32xf32>
    %132 = arith.addf %130, %131 : vector<8x32xf32>
    %c0_61 = arith.constant 0 : index
    %c0_62 = arith.constant 0 : index
    %c0_63 = arith.constant 0 : index
    %133 = vector.load %arg16[%c0_61, %c0_62, %c0_63] : memref<2x32x64xf32, #tpu.memory_space<vmem>>, vector<1x32x64xf32>
    %134 = vector.shape_cast %133 : vector<1x32x64xf32> to vector<32x64xf32>
    %cst_64 = arith.constant dense<0.000000e+00> : vector<8x64xf32>
    %135 = tpu.matmul %132, %134, %cst_64 {dimension_numbers = #tpu.dot_dimension_numbers<[1], [0], [0], [1], [0, 0, 1, 1], [], []>} : vector<8x32xf32>, vector<32x64xf32>, vector<8x64xf32> -> vector<8x64xf32>
    %c0_65 = arith.constant 0 : index
    %c0_66 = arith.constant 0 : index
    %c0_67 = arith.constant 0 : index
    %136 = vector.load %arg17[%c0_65, %c0_66, %c0_67] : memref<2x1x64xf32, #tpu.memory_space<vmem>>, vector<1x1x64xf32>
    %137 = vector.shape_cast %136 : vector<1x1x64xf32> to vector<1x64xf32>
    %138 = vector.broadcast %137 : vector<1x64xf32> to vector<8x64xf32>
    %139 = arith.addf %135, %138 : vector<8x64xf32>
    %cst_68 = arith.constant 0.000000e+00 : f32
    %140 = vector.broadcast %cst_68 : f32 to vector<8x64xf32>
    %141 = arith.maximumf %139, %140 : vector<8x64xf32>
    %c0_69 = arith.constant 0 : index
    %c0_70 = arith.constant 0 : index
    %c0_71 = arith.constant 0 : index
    %142 = vector.load %arg18[%c0_69, %c0_70, %c0_71] : memref<2x64x32xf32, #tpu.memory_space<vmem>>, vector<1x64x32xf32>
    %143 = vector.shape_cast %142 : vector<1x64x32xf32> to vector<64x32xf32>
    %cst_72 = arith.constant dense<0.000000e+00> : vector<8x32xf32>
    %144 = tpu.matmul %141, %143, %cst_72 {dimension_numbers = #tpu.dot_dimension_numbers<[1], [0], [0], [1], [0, 0, 1, 1], [], []>} : vector<8x64xf32>, vector<64x32xf32>, vector<8x32xf32> -> vector<8x32xf32>
    %c0_73 = arith.constant 0 : index
    %c0_74 = arith.constant 0 : index
    %c0_75 = arith.constant 0 : index
    %145 = vector.load %arg19[%c0_73, %c0_74, %c0_75] : memref<2x1x32xf32, #tpu.memory_space<vmem>>, vector<1x1x32xf32>
    %146 = vector.shape_cast %145 : vector<1x1x32xf32> to vector<1x32xf32>
    %147 = vector.broadcast %146 : vector<1x32xf32> to vector<8x32xf32>
    %148 = arith.addf %144, %147 : vector<8x32xf32>
    %149 = arith.addf %132, %148 : vector<8x32xf32>
    %c0_76 = arith.constant 0 : index
    %c0_77 = arith.constant 0 : index
    %c0_78 = arith.constant 0 : index
    %150 = vector.load %arg20[%c0_76, %c0_77, %c0_78] : memref<2x1x32xf32, #tpu.memory_space<vmem>>, vector<1x1x32xf32>
    %151 = vector.shape_cast %150 : vector<1x1x32xf32> to vector<1x32xf32>
    %c0_79 = arith.constant 0 : index
    %c0_80 = arith.constant 0 : index
    %c0_81 = arith.constant 0 : index
    %152 = vector.load %arg21[%c0_79, %c0_80, %c0_81] : memref<2x1x32xf32, #tpu.memory_space<vmem>>, vector<1x1x32xf32>
    %153 = vector.shape_cast %152 : vector<1x1x32xf32> to vector<1x32xf32>
    %cst_82 = arith.constant dense<0.000000e+00> : vector<8xf32>
    %154 = vector.multi_reduction <add>, %149, %cst_82 [1] : vector<8x32xf32> to vector<8xf32>
    %155 = vector.shape_cast %154 : vector<8xf32> to vector<8x1xf32>
    %cst_83 = arith.constant 3.200000e+01 : f32
    %156 = vector.broadcast %cst_83 : f32 to vector<8x1xf32>
    %157 = arith.divf %155, %156 : vector<8x1xf32>
    %158 = vector.broadcast %157 : vector<8x1xf32> to vector<8x32xf32>
    %159 = arith.subf %149, %158 : vector<8x32xf32>
    %160 = arith.mulf %159, %159 : vector<8x32xf32>
    %cst_84 = arith.constant dense<0.000000e+00> : vector<8xf32>
    %161 = vector.multi_reduction <add>, %160, %cst_84 [1] : vector<8x32xf32> to vector<8xf32>
    %162 = vector.shape_cast %161 : vector<8xf32> to vector<8x1xf32>
    %cst_85 = arith.constant 3.200000e+01 : f32
    %163 = vector.broadcast %cst_85 : f32 to vector<8x1xf32>
    %164 = arith.divf %162, %163 : vector<8x1xf32>
    %cst_86 = arith.constant 9.99999974E-6 : f32
    %165 = vector.broadcast %cst_86 : f32 to vector<8x1xf32>
    %166 = arith.addf %164, %165 : vector<8x1xf32>
    %167 = math.rsqrt %166 : vector<8x1xf32>
    %168 = vector.broadcast %167 : vector<8x1xf32> to vector<8x32xf32>
    %169 = arith.mulf %159, %168 : vector<8x32xf32>
    %170 = vector.broadcast %151 : vector<1x32xf32> to vector<8x32xf32>
    %171 = arith.mulf %169, %170 : vector<8x32xf32>
    %172 = vector.broadcast %153 : vector<1x32xf32> to vector<8x32xf32>
    %173 = arith.addf %171, %172 : vector<8x32xf32>
    %174 = arith.addf %173, %15 : vector<8x32xf32>
    %c1 = arith.constant 1 : index
    %c0_87 = arith.constant 0 : index
    %c0_88 = arith.constant 0 : index
    %175 = vector.load %arg7[%c1, %c0_87, %c0_88] : memref<2x32x64xf32, #tpu.memory_space<vmem>>, vector<1x32x64xf32>
    %176 = vector.shape_cast %175 : vector<1x32x64xf32> to vector<32x64xf32>
    %cst_89 = arith.constant dense<0.000000e+00> : vector<8x64xf32>
    %177 = tpu.matmul %174, %176, %cst_89 {dimension_numbers = #tpu.dot_dimension_numbers<[1], [0], [0], [1], [0, 0, 1, 1], [], []>} : vector<8x32xf32>, vector<32x64xf32>, vector<8x64xf32> -> vector<8x64xf32>
    %c1_90 = arith.constant 1 : index
    %c0_91 = arith.constant 0 : index
    %c0_92 = arith.constant 0 : index
    %178 = vector.load %arg8[%c1_90, %c0_91, %c0_92] : memref<2x1x64xf32, #tpu.memory_space<vmem>>, vector<1x1x64xf32>
    %179 = vector.shape_cast %178 : vector<1x1x64xf32> to vector<1x64xf32>
    %180 = vector.broadcast %179 : vector<1x64xf32> to vector<8x64xf32>
    %181 = arith.addf %177, %180 : vector<8x64xf32>
    %c1_93 = arith.constant 1 : index
    %c0_94 = arith.constant 0 : index
    %c0_95 = arith.constant 0 : index
    %182 = vector.load %arg9[%c1_93, %c0_94, %c0_95] : memref<2x32x32xf32, #tpu.memory_space<vmem>>, vector<1x32x32xf32>
    %183 = vector.shape_cast %182 : vector<1x32x32xf32> to vector<32x32xf32>
    %cst_96 = arith.constant dense<0.000000e+00> : vector<8x32xf32>
    %184 = tpu.matmul %173, %183, %cst_96 {dimension_numbers = #tpu.dot_dimension_numbers<[1], [0], [0], [1], [0, 0, 1, 1], [], []>} : vector<8x32xf32>, vector<32x32xf32>, vector<8x32xf32> -> vector<8x32xf32>
    %c1_97 = arith.constant 1 : index
    %c0_98 = arith.constant 0 : index
    %c0_99 = arith.constant 0 : index
    %185 = vector.load %arg10[%c1_97, %c0_98, %c0_99] : memref<2x1x32xf32, #tpu.memory_space<vmem>>, vector<1x1x32xf32>
    %186 = vector.shape_cast %185 : vector<1x1x32xf32> to vector<1x32xf32>
    %187 = vector.broadcast %186 : vector<1x32xf32> to vector<8x32xf32>
    %188 = arith.addf %184, %187 : vector<8x32xf32>
    %c1_100 = arith.constant 1 : index
    %c0_101 = arith.constant 0 : index
    %c0_102 = arith.constant 0 : index
    %189 = vector.load %arg13[%c1_100, %c0_101, %c0_102] : memref<2x1x4xf32, #tpu.memory_space<vmem>>, vector<1x1x4xf32>
    %190 = vector.shape_cast %189 : vector<1x1x4xf32> to vector<1x4xf32>
    %191 = vector.extract_strided_slice %181 {offsets = [0, 0], sizes = [8, 8], strides = [1, 1]} : vector<8x64xf32> to vector<8x8xf32>
    %192 = vector.extract_strided_slice %181 {offsets = [0, 32], sizes = [8, 8], strides = [1, 1]} : vector<8x64xf32> to vector<8x8xf32>
    %cst_103 = arith.constant dense<0.000000e+00> : vector<8x8xf32>
    %193 = tpu.matmul %191, %192, %cst_103 {dimension_numbers = #tpu.dot_dimension_numbers<[1], [1], [0], [0], [0, 0, 1, 0], [], []>} : vector<8x8xf32>, vector<8x8xf32>, vector<8x8xf32> -> vector<8x8xf32>
    %194 = vector.extract_strided_slice %190 {offsets = [0, 0], sizes = [1, 1], strides = [1, 1]} : vector<1x4xf32> to vector<1x1xf32>
    %195 = vector.broadcast %194 : vector<1x1xf32> to vector<8x8xf32>
    %196 = arith.mulf %31, %195 : vector<8x8xf32>
    %197 = arith.addf %193, %196 : vector<8x8xf32>
    %198 = vector.extract_strided_slice %181 {offsets = [0, 8], sizes = [8, 8], strides = [1, 1]} : vector<8x64xf32> to vector<8x8xf32>
    %199 = vector.extract_strided_slice %181 {offsets = [0, 40], sizes = [8, 8], strides = [1, 1]} : vector<8x64xf32> to vector<8x8xf32>
    %cst_104 = arith.constant dense<0.000000e+00> : vector<8x8xf32>
    %200 = tpu.matmul %198, %199, %cst_104 {dimension_numbers = #tpu.dot_dimension_numbers<[1], [1], [0], [0], [0, 0, 1, 0], [], []>} : vector<8x8xf32>, vector<8x8xf32>, vector<8x8xf32> -> vector<8x8xf32>
    %201 = vector.extract_strided_slice %190 {offsets = [0, 1], sizes = [1, 1], strides = [1, 1]} : vector<1x4xf32> to vector<1x1xf32>
    %202 = vector.broadcast %201 : vector<1x1xf32> to vector<8x8xf32>
    %203 = arith.mulf %31, %202 : vector<8x8xf32>
    %204 = arith.addf %200, %203 : vector<8x8xf32>
    %205 = vector.extract_strided_slice %181 {offsets = [0, 16], sizes = [8, 8], strides = [1, 1]} : vector<8x64xf32> to vector<8x8xf32>
    %206 = vector.extract_strided_slice %181 {offsets = [0, 48], sizes = [8, 8], strides = [1, 1]} : vector<8x64xf32> to vector<8x8xf32>
    %cst_105 = arith.constant dense<0.000000e+00> : vector<8x8xf32>
    %207 = tpu.matmul %205, %206, %cst_105 {dimension_numbers = #tpu.dot_dimension_numbers<[1], [1], [0], [0], [0, 0, 1, 0], [], []>} : vector<8x8xf32>, vector<8x8xf32>, vector<8x8xf32> -> vector<8x8xf32>
    %208 = vector.extract_strided_slice %190 {offsets = [0, 2], sizes = [1, 1], strides = [1, 1]} : vector<1x4xf32> to vector<1x1xf32>
    %209 = vector.broadcast %208 : vector<1x1xf32> to vector<8x8xf32>
    %210 = arith.mulf %31, %209 : vector<8x8xf32>
    %211 = arith.addf %207, %210 : vector<8x8xf32>
    %212 = vector.extract_strided_slice %181 {offsets = [0, 24], sizes = [8, 8], strides = [1, 1]} : vector<8x64xf32> to vector<8x8xf32>
    %213 = vector.extract_strided_slice %181 {offsets = [0, 56], sizes = [8, 8], strides = [1, 1]} : vector<8x64xf32> to vector<8x8xf32>
    %cst_106 = arith.constant dense<0.000000e+00> : vector<8x8xf32>
    %214 = tpu.matmul %212, %213, %cst_106 {dimension_numbers = #tpu.dot_dimension_numbers<[1], [1], [0], [0], [0, 0, 1, 0], [], []>} : vector<8x8xf32>, vector<8x8xf32>, vector<8x8xf32> -> vector<8x8xf32>
    %215 = vector.extract_strided_slice %190 {offsets = [0, 3], sizes = [1, 1], strides = [1, 1]} : vector<1x4xf32> to vector<1x1xf32>
    %216 = vector.broadcast %215 : vector<1x1xf32> to vector<8x8xf32>
    %217 = arith.mulf %31, %216 : vector<8x8xf32>
    %218 = arith.addf %214, %217 : vector<8x8xf32>
    %219 = tpu.concatenate %197, %204, %211, %218 in 0 : vector<8x8xf32>, vector<8x8xf32>, vector<8x8xf32>, vector<8x8xf32> -> vector<32x8xf32>
    %cst_107 = arith.constant dense<0xFF800000> : vector<32xf32>
    %220 = vector.multi_reduction <maximumf>, %219, %cst_107 [1] : vector<32x8xf32> to vector<32xf32>
    %221 = vector.shape_cast %220 : vector<32xf32> to vector<32x1xf32>
    %222 = vector.broadcast %221 : vector<32x1xf32> to vector<32x8xf32>
    %223 = arith.subf %219, %222 : vector<32x8xf32>
    %224 = math.exp %223 : vector<32x8xf32>
    %cst_108 = arith.constant dense<0.000000e+00> : vector<32xf32>
    %225 = vector.multi_reduction <add>, %224, %cst_108 [1] : vector<32x8xf32> to vector<32xf32>
    %226 = vector.shape_cast %225 : vector<32xf32> to vector<32x1xf32>
    %227 = tpu.reciprocal %226 {approx = true} : vector<32x1xf32> -> vector<32x1xf32>
    %228 = vector.broadcast %227 : vector<32x1xf32> to vector<32x8xf32>
    %229 = arith.mulf %224, %228 : vector<32x8xf32>
    %230 = vector.extract_strided_slice %229 {offsets = [0, 0], sizes = [8, 8], strides = [1, 1]} : vector<32x8xf32> to vector<8x8xf32>
    %231 = vector.extract_strided_slice %188 {offsets = [0, 0], sizes = [8, 8], strides = [1, 1]} : vector<8x32xf32> to vector<8x8xf32>
    %cst_109 = arith.constant dense<0.000000e+00> : vector<8x8xf32>
    %232 = tpu.matmul %230, %231, %cst_109 {dimension_numbers = #tpu.dot_dimension_numbers<[1], [0], [0], [1], [0, 0, 1, 1], [], []>} : vector<8x8xf32>, vector<8x8xf32>, vector<8x8xf32> -> vector<8x8xf32>
    %233 = vector.extract_strided_slice %229 {offsets = [8, 0], sizes = [8, 8], strides = [1, 1]} : vector<32x8xf32> to vector<8x8xf32>
    %234 = vector.extract_strided_slice %188 {offsets = [0, 8], sizes = [8, 8], strides = [1, 1]} : vector<8x32xf32> to vector<8x8xf32>
    %cst_110 = arith.constant dense<0.000000e+00> : vector<8x8xf32>
    %235 = tpu.matmul %233, %234, %cst_110 {dimension_numbers = #tpu.dot_dimension_numbers<[1], [0], [0], [1], [0, 0, 1, 1], [], []>} : vector<8x8xf32>, vector<8x8xf32>, vector<8x8xf32> -> vector<8x8xf32>
    %236 = vector.extract_strided_slice %229 {offsets = [16, 0], sizes = [8, 8], strides = [1, 1]} : vector<32x8xf32> to vector<8x8xf32>
    %237 = vector.extract_strided_slice %188 {offsets = [0, 16], sizes = [8, 8], strides = [1, 1]} : vector<8x32xf32> to vector<8x8xf32>
    %cst_111 = arith.constant dense<0.000000e+00> : vector<8x8xf32>
    %238 = tpu.matmul %236, %237, %cst_111 {dimension_numbers = #tpu.dot_dimension_numbers<[1], [0], [0], [1], [0, 0, 1, 1], [], []>} : vector<8x8xf32>, vector<8x8xf32>, vector<8x8xf32> -> vector<8x8xf32>
    %239 = vector.extract_strided_slice %229 {offsets = [24, 0], sizes = [8, 8], strides = [1, 1]} : vector<32x8xf32> to vector<8x8xf32>
    %240 = vector.extract_strided_slice %188 {offsets = [0, 24], sizes = [8, 8], strides = [1, 1]} : vector<8x32xf32> to vector<8x8xf32>
    %cst_112 = arith.constant dense<0.000000e+00> : vector<8x8xf32>
    %241 = tpu.matmul %239, %240, %cst_112 {dimension_numbers = #tpu.dot_dimension_numbers<[1], [0], [0], [1], [0, 0, 1, 1], [], []>} : vector<8x8xf32>, vector<8x8xf32>, vector<8x8xf32> -> vector<8x8xf32>
    %242 = tpu.concatenate %232, %235, %238, %241 in 1 : vector<8x8xf32>, vector<8x8xf32>, vector<8x8xf32>, vector<8x8xf32> -> vector<8x32xf32>
    %c1_113 = arith.constant 1 : index
    %c0_114 = arith.constant 0 : index
    %c0_115 = arith.constant 0 : index
    %243 = vector.load %arg11[%c1_113, %c0_114, %c0_115] : memref<2x32x32xf32, #tpu.memory_space<vmem>>, vector<1x32x32xf32>
    %244 = vector.shape_cast %243 : vector<1x32x32xf32> to vector<32x32xf32>
    %cst_116 = arith.constant dense<0.000000e+00> : vector<8x32xf32>
    %245 = tpu.matmul %242, %244, %cst_116 {dimension_numbers = #tpu.dot_dimension_numbers<[1], [0], [0], [1], [0, 0, 1, 1], [], []>} : vector<8x32xf32>, vector<32x32xf32>, vector<8x32xf32> -> vector<8x32xf32>
    %c1_117 = arith.constant 1 : index
    %c0_118 = arith.constant 0 : index
    %c0_119 = arith.constant 0 : index
    %246 = vector.load %arg12[%c1_117, %c0_118, %c0_119] : memref<2x1x32xf32, #tpu.memory_space<vmem>>, vector<1x1x32xf32>
    %247 = vector.shape_cast %246 : vector<1x1x32xf32> to vector<1x32xf32>
    %248 = vector.broadcast %247 : vector<1x32xf32> to vector<8x32xf32>
    %249 = arith.addf %245, %248 : vector<8x32xf32>
    %250 = arith.addf %173, %249 : vector<8x32xf32>
    %c1_120 = arith.constant 1 : index
    %c0_121 = arith.constant 0 : index
    %c0_122 = arith.constant 0 : index
    %251 = vector.load %arg14[%c1_120, %c0_121, %c0_122] : memref<2x1x32xf32, #tpu.memory_space<vmem>>, vector<1x1x32xf32>
    %252 = vector.shape_cast %251 : vector<1x1x32xf32> to vector<1x32xf32>
    %c1_123 = arith.constant 1 : index
    %c0_124 = arith.constant 0 : index
    %c0_125 = arith.constant 0 : index
    %253 = vector.load %arg15[%c1_123, %c0_124, %c0_125] : memref<2x1x32xf32, #tpu.memory_space<vmem>>, vector<1x1x32xf32>
    %254 = vector.shape_cast %253 : vector<1x1x32xf32> to vector<1x32xf32>
    %cst_126 = arith.constant dense<0.000000e+00> : vector<8xf32>
    %255 = vector.multi_reduction <add>, %250, %cst_126 [1] : vector<8x32xf32> to vector<8xf32>
    %256 = vector.shape_cast %255 : vector<8xf32> to vector<8x1xf32>
    %cst_127 = arith.constant 3.200000e+01 : f32
    %257 = vector.broadcast %cst_127 : f32 to vector<8x1xf32>
    %258 = arith.divf %256, %257 : vector<8x1xf32>
    %259 = vector.broadcast %258 : vector<8x1xf32> to vector<8x32xf32>
    %260 = arith.subf %250, %259 : vector<8x32xf32>
    %261 = arith.mulf %260, %260 : vector<8x32xf32>
    %cst_128 = arith.constant dense<0.000000e+00> : vector<8xf32>
    %262 = vector.multi_reduction <add>, %261, %cst_128 [1] : vector<8x32xf32> to vector<8xf32>
    %263 = vector.shape_cast %262 : vector<8xf32> to vector<8x1xf32>
    %cst_129 = arith.constant 3.200000e+01 : f32
    %264 = vector.broadcast %cst_129 : f32 to vector<8x1xf32>
    %265 = arith.divf %263, %264 : vector<8x1xf32>
    %cst_130 = arith.constant 9.99999974E-6 : f32
    %266 = vector.broadcast %cst_130 : f32 to vector<8x1xf32>
    %267 = arith.addf %265, %266 : vector<8x1xf32>
    %268 = math.rsqrt %267 : vector<8x1xf32>
    %269 = vector.broadcast %268 : vector<8x1xf32> to vector<8x32xf32>
    %270 = arith.mulf %260, %269 : vector<8x32xf32>
    %271 = vector.broadcast %252 : vector<1x32xf32> to vector<8x32xf32>
    %272 = arith.mulf %270, %271 : vector<8x32xf32>
    %273 = vector.broadcast %254 : vector<1x32xf32> to vector<8x32xf32>
    %274 = arith.addf %272, %273 : vector<8x32xf32>
    %c1_131 = arith.constant 1 : index
    %c0_132 = arith.constant 0 : index
    %c0_133 = arith.constant 0 : index
    %275 = vector.load %arg16[%c1_131, %c0_132, %c0_133] : memref<2x32x64xf32, #tpu.memory_space<vmem>>, vector<1x32x64xf32>
    %276 = vector.shape_cast %275 : vector<1x32x64xf32> to vector<32x64xf32>
    %cst_134 = arith.constant dense<0.000000e+00> : vector<8x64xf32>
    %277 = tpu.matmul %274, %276, %cst_134 {dimension_numbers = #tpu.dot_dimension_numbers<[1], [0], [0], [1], [0, 0, 1, 1], [], []>} : vector<8x32xf32>, vector<32x64xf32>, vector<8x64xf32> -> vector<8x64xf32>
    %c1_135 = arith.constant 1 : index
    %c0_136 = arith.constant 0 : index
    %c0_137 = arith.constant 0 : index
    %278 = vector.load %arg17[%c1_135, %c0_136, %c0_137] : memref<2x1x64xf32, #tpu.memory_space<vmem>>, vector<1x1x64xf32>
    %279 = vector.shape_cast %278 : vector<1x1x64xf32> to vector<1x64xf32>
    %280 = vector.broadcast %279 : vector<1x64xf32> to vector<8x64xf32>
    %281 = arith.addf %277, %280 : vector<8x64xf32>
    %cst_138 = arith.constant 0.000000e+00 : f32
    %282 = vector.broadcast %cst_138 : f32 to vector<8x64xf32>
    %283 = arith.maximumf %281, %282 : vector<8x64xf32>
    %c1_139 = arith.constant 1 : index
    %c0_140 = arith.constant 0 : index
    %c0_141 = arith.constant 0 : index
    %284 = vector.load %arg18[%c1_139, %c0_140, %c0_141] : memref<2x64x32xf32, #tpu.memory_space<vmem>>, vector<1x64x32xf32>
    %285 = vector.shape_cast %284 : vector<1x64x32xf32> to vector<64x32xf32>
    %cst_142 = arith.constant dense<0.000000e+00> : vector<8x32xf32>
    %286 = tpu.matmul %283, %285, %cst_142 {dimension_numbers = #tpu.dot_dimension_numbers<[1], [0], [0], [1], [0, 0, 1, 1], [], []>} : vector<8x64xf32>, vector<64x32xf32>, vector<8x32xf32> -> vector<8x32xf32>
    %c1_143 = arith.constant 1 : index
    %c0_144 = arith.constant 0 : index
    %c0_145 = arith.constant 0 : index
    %287 = vector.load %arg19[%c1_143, %c0_144, %c0_145] : memref<2x1x32xf32, #tpu.memory_space<vmem>>, vector<1x1x32xf32>
    %288 = vector.shape_cast %287 : vector<1x1x32xf32> to vector<1x32xf32>
    %289 = vector.broadcast %288 : vector<1x32xf32> to vector<8x32xf32>
    %290 = arith.addf %286, %289 : vector<8x32xf32>
    %291 = arith.addf %274, %290 : vector<8x32xf32>
    %c1_146 = arith.constant 1 : index
    %c0_147 = arith.constant 0 : index
    %c0_148 = arith.constant 0 : index
    %292 = vector.load %arg20[%c1_146, %c0_147, %c0_148] : memref<2x1x32xf32, #tpu.memory_space<vmem>>, vector<1x1x32xf32>
    %293 = vector.shape_cast %292 : vector<1x1x32xf32> to vector<1x32xf32>
    %c1_149 = arith.constant 1 : index
    %c0_150 = arith.constant 0 : index
    %c0_151 = arith.constant 0 : index
    %294 = vector.load %arg21[%c1_149, %c0_150, %c0_151] : memref<2x1x32xf32, #tpu.memory_space<vmem>>, vector<1x1x32xf32>
    %295 = vector.shape_cast %294 : vector<1x1x32xf32> to vector<1x32xf32>
    %cst_152 = arith.constant dense<0.000000e+00> : vector<8xf32>
    %296 = vector.multi_reduction <add>, %291, %cst_152 [1] : vector<8x32xf32> to vector<8xf32>
    %297 = vector.shape_cast %296 : vector<8xf32> to vector<8x1xf32>
    %cst_153 = arith.constant 3.200000e+01 : f32
    %298 = vector.broadcast %cst_153 : f32 to vector<8x1xf32>
    %299 = arith.divf %297, %298 : vector<8x1xf32>
    %300 = vector.broadcast %299 : vector<8x1xf32> to vector<8x32xf32>
    %301 = arith.subf %291, %300 : vector<8x32xf32>
    %302 = arith.mulf %301, %301 : vector<8x32xf32>
    %cst_154 = arith.constant dense<0.000000e+00> : vector<8xf32>
    %303 = vector.multi_reduction <add>, %302, %cst_154 [1] : vector<8x32xf32> to vector<8xf32>
    %304 = vector.shape_cast %303 : vector<8xf32> to vector<8x1xf32>
    %cst_155 = arith.constant 3.200000e+01 : f32
    %305 = vector.broadcast %cst_155 : f32 to vector<8x1xf32>
    %306 = arith.divf %304, %305 : vector<8x1xf32>
    %cst_156 = arith.constant 9.99999974E-6 : f32
    %307 = vector.broadcast %cst_156 : f32 to vector<8x1xf32>
    %308 = arith.addf %306, %307 : vector<8x1xf32>
    %309 = math.rsqrt %308 : vector<8x1xf32>
    %310 = vector.broadcast %309 : vector<8x1xf32> to vector<8x32xf32>
    %311 = arith.mulf %301, %310 : vector<8x32xf32>
    %312 = vector.broadcast %293 : vector<1x32xf32> to vector<8x32xf32>
    %313 = arith.mulf %311, %312 : vector<8x32xf32>
    %314 = vector.broadcast %295 : vector<1x32xf32> to vector<8x32xf32>
    %315 = arith.addf %313, %314 : vector<8x32xf32>
    %c0_157 = arith.constant 0 : index
    %c0_158 = arith.constant 0 : index
    %c0_159 = arith.constant 0 : index
    %316 = vector.load %arg22[%c0_157, %c0_158, %c0_159] : memref<1x32x16xf32, #tpu.memory_space<vmem>>, vector<1x32x16xf32>
    %317 = vector.shape_cast %316 : vector<1x32x16xf32> to vector<32x16xf32>
    %cst_160 = arith.constant dense<0.000000e+00> : vector<8x16xf32>
    %318 = tpu.matmul %315, %317, %cst_160 {dimension_numbers = #tpu.dot_dimension_numbers<[1], [0], [0], [1], [0, 0, 1, 1], [], []>} : vector<8x32xf32>, vector<32x16xf32>, vector<8x16xf32> -> vector<8x16xf32>
    %c0_161 = arith.constant 0 : index
    %c0_162 = arith.constant 0 : index
    %c0_163 = arith.constant 0 : index
    %319 = vector.load %arg23[%c0_161, %c0_162, %c0_163] : memref<1x1x16xf32, #tpu.memory_space<vmem>>, vector<1x1x16xf32>
    %320 = vector.shape_cast %319 : vector<1x1x16xf32> to vector<1x16xf32>
    %321 = vector.broadcast %320 : vector<1x16xf32> to vector<8x16xf32>
    %322 = arith.addf %318, %321 : vector<8x16xf32>
    %c0_164 = arith.constant 0 : index
    %c0_165 = arith.constant 0 : index
    %c0_166 = arith.constant 0 : index
    %c0_167 = arith.constant 0 : index
    %323 = vector.load %arg24[%c0_164, %c0_165, %c0_166, %c0_167] : memref<1x1x8x16xf32, #tpu.memory_space<vmem>>, vector<1x1x8x16xf32>
    %324 = vector.shape_cast %323 : vector<1x1x8x16xf32> to vector<8x16xf32>
    %325 = vector.shape_cast %322 : vector<8x16xf32> to vector<1x1x8x16xf32>
    tpu.vector_store %arg24[%c0_164, %c0_165, %c0_166, %c0_167], %325 {strides = array<i32>} : memref<1x1x8x16xf32, #tpu.memory_space<vmem>>, vector<1x1x8x16xf32>,
    return
  }
  func.func @transform_0(%arg0: i32) -> (i32, i32, i32) {
    %c0_i32 = arith.constant 0 : i32
    %c0_i32_0 = arith.constant 0 : i32
    %c0_i32_1 = arith.constant 0 : i32
    return %arg0, %c0_i32, %c0_i32_0 : i32, i32, i32
  }
  func.func @transform_1(%arg0: i32) -> (i32, i32, i32) {
    %c0_i32 = arith.constant 0 : i32
    %c0_i32_0 = arith.constant 0 : i32
    %c0_i32_1 = arith.constant 0 : i32
    return %arg0, %c0_i32, %c0_i32_0 : i32, i32, i32
  }
  func.func @transform_2(%arg0: i32) -> (i32, i32) {
    %c0_i32 = arith.constant 0 : i32
    %c0_i32_0 = arith.constant 0 : i32
    %c0_i32_1 = arith.constant 0 : i32
    return %c0_i32, %c0_i32_0 : i32, i32
  }
  func.func @transform_3(%arg0: i32) -> (i32, i32) {
    %c0_i32 = arith.constant 0 : i32
    %c0_i32_0 = arith.constant 0 : i32
    %c0_i32_1 = arith.constant 0 : i32
    return %c0_i32, %c0_i32_0 : i32, i32
  }
  func.func @transform_4(%arg0: i32) -> (i32, i32) {
    %c0_i32 = arith.constant 0 : i32
    %c0_i32_0 = arith.constant 0 : i32
    %c0_i32_1 = arith.constant 0 : i32
    return %c0_i32, %c0_i32_0 : i32, i32
  }
  func.func @transform_5(%arg0: i32) -> (i32, i32) {
    %c0_i32 = arith.constant 0 : i32
    %c0_i32_0 = arith.constant 0 : i32
    %c0_i32_1 = arith.constant 0 : i32
    return %c0_i32, %c0_i32_0 : i32, i32
  }
  func.func @transform_6(%arg0: i32) -> (i32, i32, i32) {
    %c0_i32 = arith.constant 0 : i32
    %c0_i32_0 = arith.constant 0 : i32
    %c0_i32_1 = arith.constant 0 : i32
    %c0_i32_2 = arith.constant 0 : i32
    return %c0_i32, %c0_i32_0, %c0_i32_1 : i32, i32, i32
  }
  func.func @transform_7(%arg0: i32) -> (i32, i32, i32) {
    %c0_i32 = arith.constant 0 : i32
    %c0_i32_0 = arith.constant 0 : i32
    %c0_i32_1 = arith.constant 0 : i32
    %c0_i32_2 = arith.constant 0 : i32
    return %c0_i32, %c0_i32_0, %c0_i32_1 : i32, i32, i32
  }
  func.func @transform_8(%arg0: i32) -> (i32, i32, i32) {
    %c0_i32 = arith.constant 0 : i32
    %c0_i32_0 = arith.constant 0 : i32
    %c0_i32_1 = arith.constant 0 : i32
    %c0_i32_2 = arith.constant 0 : i32
    return %c0_i32, %c0_i32_0, %c0_i32_1 : i32, i32, i32
  }
  func.func @transform_9(%arg0: i32) -> (i32, i32, i32) {
    %c0_i32 = arith.constant 0 : i32
    %c0_i32_0 = arith.constant 0 : i32
    %c0_i32_1 = arith.constant 0 : i32
    %c0_i32_2 = arith.constant 0 : i32
    return %c0_i32, %c0_i32_0, %c0_i32_1 : i32, i32, i32
  }
  func.func @transform_10(%arg0: i32) -> (i32, i32, i32) {
    %c0_i32 = arith.constant 0 : i32
    %c0_i32_0 = arith.constant 0 : i32
    %c0_i32_1 = arith.constant 0 : i32
    %c0_i32_2 = arith.constant 0 : i32
    return %c0_i32, %c0_i32_0, %c0_i32_1 : i32, i32, i32
  }
  func.func @transform_11(%arg0: i32) -> (i32, i32, i32) {
    %c0_i32 = arith.constant 0 : i32
    %c0_i32_0 = arith.constant 0 : i32
    %c0_i32_1 = arith.constant 0 : i32
    %c0_i32_2 = arith.constant 0 : i32
    return %c0_i32, %c0_i32_0, %c0_i32_1 : i32, i32, i32
  }
  func.func @transform_12(%arg0: i32) -> (i32, i32, i32) {
    %c0_i32 = arith.constant 0 : i32
    %c0_i32_0 = arith.constant 0 : i32
    %c0_i32_1 = arith.constant 0 : i32
    %c0_i32_2 = arith.constant 0 : i32
    return %c0_i32, %c0_i32_0, %c0_i32_1 : i32, i32, i32
  }
  func.func @transform_13(%arg0: i32) -> (i32, i32, i32) {
    %c0_i32 = arith.constant 0 : i32
    %c0_i32_0 = arith.constant 0 : i32
    %c0_i32_1 = arith.constant 0 : i32
    %c0_i32_2 = arith.constant 0 : i32
    return %c0_i32, %c0_i32_0, %c0_i32_1 : i32, i32, i32
  }
  func.func @transform_14(%arg0: i32) -> (i32, i32, i32) {
    %c0_i32 = arith.constant 0 : i32
    %c0_i32_0 = arith.constant 0 : i32
    %c0_i32_1 = arith.constant 0 : i32
    %c0_i32_2 = arith.constant 0 : i32
    return %c0_i32, %c0_i32_0, %c0_i32_1 : i32, i32, i32
  }
  func.func @transform_15(%arg0: i32) -> (i32, i32, i32) {
    %c0_i32 = arith.constant 0 : i32
    %c0_i32_0 = arith.constant 0 : i32
    %c0_i32_1 = arith.constant 0 : i32
    %c0_i32_2 = arith.constant 0 : i32
    return %c0_i32, %c0_i32_0, %c0_i32_1 : i32, i32, i32
  }
  func.func @transform_16(%arg0: i32) -> (i32, i32, i32) {
    %c0_i32 = arith.constant 0 : i32
    %c0_i32_0 = arith.constant 0 : i32
    %c0_i32_1 = arith.constant 0 : i32
    %c0_i32_2 = arith.constant 0 : i32
    return %c0_i32, %c0_i32_0, %c0_i32_1 : i32, i32, i32
  }
  func.func @transform_17(%arg0: i32) -> (i32, i32, i32) {
    %c0_i32 = arith.constant 0 : i32
    %c0_i32_0 = arith.constant 0 : i32
    %c0_i32_1 = arith.constant 0 : i32
    %c0_i32_2 = arith.constant 0 : i32
    return %c0_i32, %c0_i32_0, %c0_i32_1 : i32, i32, i32
  }
  func.func @transform_18(%arg0: i32) -> (i32, i32, i32) {
    %c0_i32 = arith.constant 0 : i32
    %c0_i32_0 = arith.constant 0 : i32
    %c0_i32_1 = arith.constant 0 : i32
    %c0_i32_2 = arith.constant 0 : i32
    return %c0_i32, %c0_i32_0, %c0_i32_1 : i32, i32, i32
  }
  func.func @transform_19(%arg0: i32) -> (i32, i32, i32) {
    %c0_i32 = arith.constant 0 : i32
    %c0_i32_0 = arith.constant 0 : i32
    %c0_i32_1 = arith.constant 0 : i32
    %c0_i32_2 = arith.constant 0 : i32
    return %c0_i32, %c0_i32_0, %c0_i32_1 : i32, i32, i32
  }
  func.func @transform_20(%arg0: i32) -> (i32, i32, i32) {
    %c0_i32 = arith.constant 0 : i32
    %c0_i32_0 = arith.constant 0 : i32
    %c0_i32_1 = arith.constant 0 : i32
    %c0_i32_2 = arith.constant 0 : i32
    return %c0_i32, %c0_i32_0, %c0_i32_1 : i32, i32, i32
  }
  func.func @transform_21(%arg0: i32) -> (i32, i32, i32) {
    %c0_i32 = arith.constant 0 : i32
    %c0_i32_0 = arith.constant 0 : i32
    %c0_i32_1 = arith.constant 0 : i32
    %c0_i32_2 = arith.constant 0 : i32
    return %c0_i32, %c0_i32_0, %c0_i32_1 : i32, i32, i32
  }
  func.func @transform_22(%arg0: i32) -> (i32, i32, i32) {
    %c0_i32 = arith.constant 0 : i32
    %c0_i32_0 = arith.constant 0 : i32
    %c0_i32_1 = arith.constant 0 : i32
    %c0_i32_2 = arith.constant 0 : i32
    return %c0_i32, %c0_i32_0, %c0_i32_1 : i32, i32, i32
  }
  func.func @transform_23(%arg0: i32) -> (i32, i32, i32, i32) {
    %c0_i32 = arith.constant 0 : i32
    %c0_i32_0 = arith.constant 0 : i32
    %c0_i32_1 = arith.constant 0 : i32
    %c0_i32_2 = arith.constant 0 : i32
    return %c0_i32, %arg0, %c0_i32_0, %c0_i32_1 : i32, i32, i32, i32
  }
}

</mosaic_0001>

<bundles_post_ra>
// kernel: tpu_custom_call.1
= control target key start
LH: loop header
LB: loop body
LE: loop exit
PB: predicated region body
PF: predicated region fallthrough
CT: control target
= control target key end

     0   :  { %s5308_s0 = inlined_call_operand.hbm [shape: f32[2,8,32], index: 0, kind: input, shape index: {}]   ;;  %s5309_s1 = inlined_call_operand.vmem [shape: f32[2,8,4], index: 1, kind: input, shape index: {}]   ;;  %s5310_s2 = inlined_call_operand.hbm [shape: f32[4,64], index: 2, kind: input, shape index: {}]   ;;  %s5311_s3 = inlined_call_operand.hbm [shape: f32[1,64], index: 3, kind: input, shape index: {}]   ;;  %s5312_s4 = inlined_call_operand.vmem [shape: f32[64,32], index: 4, kind: input, shape index: {}]   ;;  %s5313_s5 = inlined_call_operand.hbm [shape: f32[1,32], index: 5, kind: input, shape index: {}]   ;;  %s5314_s6 = inlined_call_operand.vmem [shape: f32[2,32,64], index: 6, kind: input, shape index: {}]   ;;  %s5315_s7 = inlined_call_operand.vmem [shape: f32[2,1,64], index: 7, kind: input, shape index: {}]   ;;  %s5316_s8 = inlined_call_operand.vmem [shape: f32[2,32,32], index: 8, kind: input, shape index: {}]   ;;  %s5317_s9 = inlined_call_operand.vmem [shape: f32[2,1,32], index: 9, kind: input, shape index: {}]   ;;  %s5318_s10 = inlined_call_operand.vmem [shape: f32[2,32,32], index: 10, kind: input, shape index: {}]   ;;  %s5319_s11 = inlined_call_operand.vmem [shape: f32[2,1,32], index: 11, kind: input, shape index: {}]   ;;  %s5320_s12 = inlined_call_operand.vmem [shape: f32[2,1,4], index: 12, kind: input, shape index: {}]   ;;  %s5321_s13 = inlined_call_operand.vmem [shape: f32[2,1,32], index: 13, kind: input, shape index: {}]   ;;  %s5322_s14 = inlined_call_operand.vmem [shape: f32[2,1,32], index: 14, kind: input, shape index: {}]   ;;  %s5323_s15 = inlined_call_operand.vmem [shape: f32[2,32,64], index: 15, kind: input, shape index: {}]   ;;  %s5324_s16 = inlined_call_operand.vmem [shape: f32[2,1,64], index: 16, kind: input, shape index: {}]   ;;  %s5325_s17 = inlined_call_operand.vmem [shape: f32[2,64,32], index: 17, kind: input, shape index: {}]   ;;  %s5326_s18 = inlined_call_operand.vmem [shape: f32[2,1,32], index: 18, kind: input, shape index: {}]   ;;  %s5327_s19 = inlined_call_operand.vmem [shape: f32[2,1,32], index: 19, kind: input, shape index: {}]   ;;  %s5328_s20 = inlined_call_operand.vmem [shape: f32[2,1,32], index: 20, kind: input, shape index: {}]   ;;  %s5329_s21 = inlined_call_operand.vmem [shape: f32[1,32,16], index: 21, kind: input, shape index: {}]   ;;  %s5330_s22 = inlined_call_operand.vmem [shape: f32[1,1,16], index: 22, kind: input, shape index: {}]   ;;  %s5331_s23 = inlined_call_operand.hbm [shape: f32[1,2,8,16], index: 23, kind: output, shape index: {}]  }
   0x1   :  { %5364 = sst [smem:[#allocation22_spill]] %s5308_s0 }
   0x2   :  { %5365 = sst [smem:[#allocation23_spill]] %s5309_s1 }
   0x3   :  { %5366 = sst [smem:[#allocation24_spill]] %s5310_s2 }
   0x4   :  { %5367 = sst [smem:[#allocation25_spill]] %s5311_s3 }
   0x5   :  { %5368 = sst [smem:[#allocation26_spill]] %s5312_s4 }
   0x6   :  { %5369 = sst [smem:[#allocation27_spill]] %s5313_s5 }
   0x7   :  { %5370 = sst [smem:[#allocation28_spill]] %s5314_s6 }
   0x8   :  { %5371 = sst [smem:[#allocation29_spill]] %s5315_s7 }
   0x9   :  { %5372 = sst [smem:[#allocation30_spill]] %s5328_s20 }
   0xa   :  { %5373 = sst [smem:[#allocation31_spill]] %s5329_s21 }
   0xb   :  { %5374 = sst [smem:[#allocation32_spill]] %s5330_s22 }
   0xc   :  { %5375 = sst [smem:[#allocation33_spill]] %s5331_s23 }
   0xd   :  { %28 = vsyncpa [#allocation3], 0 }
   0xe   :  { %30 = vsyncpa [#allocation3 + $0x1], 0 }
   0xf   :  { %31 = vsyncpa [#allocation6], 0 }
  0x10   :  { %32 = vsyncpa [#allocation9], 0 }
  0x11   :  { %33 = vsyncpa [#allocation4], 0 }
  0x12   :  { %35 = vsyncpa [#allocation4 + $0x1], 0  ;;  %s4583_s4 = smov 0   ;;  %s4585_s30 = smov 0  }
  0x13   :  { %s4587_s24 = smov 0   ;;  %s4589_s25 = smov 0  }
  0x14 LB: > { %5376 = sst [smem:[#allocation15_spill]] %s4427_s4  ;;  %s4604_s5 = sadd.s32 4294967295, %s4439_s25   ;;  %s4439_s25 = sphi %s4589_s25, %s5424_s25   ;;  %s4435_s24 = sphi %s4587_s24, %s5426_s24   ;;  %s4431_s30 = sphi %s4585_s30, %s5428_s30   ;;  %s4427_s4 = sphi %s4583_s4, %s5427_s4  }
  0x15   : > { %5377 = sst [smem:[#allocation16_spill]] %s4435_s24  ;;  %s3653_s1 = sadd.s32 4294967294, %s4439_s25  }
  0x16   : > { %5378 = sst [smem:[#allocation17_spill]] %s4439_s25  ;;  %p61_p0 = scmp.ne.s32.totalorder %s4431_s30, %s4427_s4 }
  0x17   : > { %p5338_p1 = scmp.eq.s32.totalorder %s4604_s5, 0  ;;  %p558_p3 = scmp.eq.s32.totalorder %s3653_s1, 1 }
  0x18   : > { %p3654_p5 = scmp.ge.s32.totalorder %s4439_s25, 1  ;;  %p565_p7 = scmp.lt.s32.totalorder %s4439_s25, 3 }
  0x19   : > { %p4613_p4 = por %p5338_p1, %p61_p0  ;;  %p4618_p6 = por %p558_p3, %p61_p0 }
  0x1a   : > { %p4623_p8 = pnand %p3654_p5, %p565_p7  ;;  %s4441_s27 = smov [#allocation5]  }
  0x1b   : > { %s5379_s26 = scalar_select %p4613_p4, 1, 0 }
  0x1c   : > { %s5380_s2 = scalar_select %p4618_p6, 1, 0 }
  0x1d   : > { %s5382_s6 = scalar_select %p4623_p8, 1, 0 }
  0x1e   : > { %5381 = sst [smem:[#allocation18_spill]] %s5380_s2  ;;  %s578_s7 = sshll.u32 %s4441_s27, 4  ;;  %s579_s7 = int_to_ptr.vmem [resolvable:$true] %s578_s7 }
  0x1f   : > { %p4130_p10 = pneg %p4623_p8  ;;  %s4442_s28 = smov [#allocation7]  }
  0x20   : > { %s589_s29 = sshll.u32 %s4442_s28, 4  ;;  %s4443_s0 = smov [#allocation8]   ;;  %s590_s29 = int_to_ptr.vmem [resolvable:$true] %s589_s29 }
  0x21   : > { %p4632_p11 = pnand %p4130_p10, %p5338_p1  ;;  %s603_s1 = sshll.u32 %s4443_s0, 4  ;;  %s4636_s1 = int_to_ptr.vmem [resolvable:$true] %s603_s1 }
  0x22   : > { %s4272_s27 = scalar_lea.vmem %s579_s7, 64  ;;  %p4280_p5 = scmp.lt.s32.totalorder %s579_s7, %s579_s7 }
  0x23   : > { %p4263_p12 = pneg %p4632_p11  ;;  %p4273_p13 = scmp.ne.s32.totalorder %s579_s7, %s4272_s27 }
  0x24   : > { %p4281_p7 = scmp.lt.s32.totalorder %s4272_s27, %s4272_s27 }
  0x25   : > { %p4275_p0 = pnand %p4273_p13, %p4263_p12 }
  0x26   : > { %p4282_p10 = por %p4281_p7, %p4280_p5 }
  0x27   : > { %p4276_p3 = pneg %p4275_p0 }
  0x29   : > { %p4283_p9 = pnand %p4282_p10, %p4276_p3 }
  0x2b   : > { %4286 = shalt.err (!%p4283_p9)
}
  0x2c   : > { %s5384_s0 = sld [smem:[#allocation24_spill]]  ;;  %s4298_s4 = scalar_lea.vmem %s590_s29, 16 }
  0x2d   : > { %p4299_p1 = scmp.ne.s32.totalorder %s590_s29, %s4298_s4  ;;  %s4305_s23 = scalar_lea.vmem %s590_s29, 32 }
  0x2e   : > { %p4306_p13 = scmp.lt.s32.totalorder %s590_s29, %s590_s29  ;;  %p4307_p0 = scmp.lt.s32.totalorder %s4305_s23, %s4298_s4 }
  0x2f   : > { %p4301_p2 = pnand %p4299_p1, %p4263_p12 }
  0x30   : > { %p4308_p4 = por %p4307_p0, %p4306_p13 }
  0x31   : > { %p4302_p6 = pneg %p4301_p2 }
  0x32   : > { %4133 = dma.hbm_to_vmem [thread:$0]  (!%p4632_p11), %s5384_s0, 64, %s579_s7, [#allocation6]  }
  0x33   : > { %p4309_p5 = pnand %p4308_p4, %p4302_p6 }
  0x35   : > { %4312 = shalt.err (!%p4309_p5)
}
  0x36   : > { %s5385_s21 = sld [smem:[#allocation25_spill]]  ;;  %s4324_s2 = scalar_lea.vmem %s4636_s1, 16 }
  0x37   : > { %p4325_p1 = scmp.ne.s32.totalorder %s4636_s1, %s4324_s2  ;;  %s4331_s23 = scalar_lea.vmem %s4636_s1, 32 }
  0x38   : > { %p4332_p4 = scmp.lt.s32.totalorder %s4636_s1, %s4636_s1  ;;  %p4333_p6 = scmp.lt.s32.totalorder %s4331_s23, %s4324_s2 }
  0x39   : > { %p4327_p2 = pnand %p4325_p1, %p4263_p12 }
  0x3a   : > { %p4334_p3 = por %p4333_p6, %p4332_p4 }
  0x3b   : > { %p4328_p9 = pneg %p4327_p2 }
  0x3c   : > { %4136 = dma.hbm_to_vmem [thread:$0]  (!%p4632_p11), %s5385_s21, 16, %s590_s29, [#allocation6]  }
  0x3d   : > { %p4335_p7 = pnand %p4334_p3, %p4328_p9 }
  0x3f   : > { %4338 = shalt.err (!%p4335_p7)
}
  0x40   : > { %s5386_s7 = sld [smem:[#allocation27_spill]]  ;;  %s4671_s21 = sadd.s32 1, %s4439_s25  }
  0x41   : > { %5387 = sst [smem:[#allocation19_spill]] %s4671_s21  ;;  %s45_s29 = ssub.s32 %s4439_s25, %s4671_s21 }
  0x42   : > { %s48_s3 = sadd.s32 1, %s4435_s24  ;;  %p46_p12 = scmp.eq.s32.totalorder %s45_s29, 0 }
  0x43   : > { %p55_p10 = scmp.ne.s32.totalorder %s4435_s24, %s4431_s30  ;;  %p56_p13 = scmp.eq.s32.totalorder %s4439_s25, 0 }
  0x44   : > { %p4151_p0 = scmp.lt.s32.totalorder %s4439_s25, 2  ;;  %p5389_p1 = scmp.eq.s32.totalorder %s4604_s5, 1 }
  0x45   : > { %s4681_s28 = scalar_select %p46_p12, %s4435_s24, %s48_s3  }
  0x46   : > { %4139 = dma.hbm_to_vmem [thread:$0]  (!%p4632_p11), %s5386_s7, 16, %s4636_s1, [#allocation9]  }
  0x47   : > { %5388 = sst [smem:[#allocation20_spill]] %s4681_s28  ;;  %p57_p5 = por %p56_p13, %p55_p10 }
  0x48   : > { %p4685_p2 = por %p5389_p1, %p55_p10  ;;  %s665_s27 = sand.u32 1, %s4435_s24  }
  0x49   : > { %s3660_s2 = sshll.u32 %s4439_s25, 7  ;;  %s3659_s1 = sshll.u32 %s665_s27, 3 }
  0x4a   : > { %s5390_s0 = scalar_select %p4685_p2, 1, 0 }
  0x4b   : > { %s5392_s4 = sld [smem:[#allocation22_spill]]  ;;  %s669_s29 = scalar_lea.vmem [#allocation2], %s3659_s1 }
  0x4c   : > { %5391 = sst [smem:[#allocation21_spill]] %s5390_s0  ;;  %s676_s3 = sshll.u32 %s669_s29, 4  ;;  %s677_s3 = int_to_ptr.vmem [resolvable:$true] %s676_s3 }
  0x4d   : > { %p4696_p11 = pnand %p4151_p0, %p57_p5  ;;  %s666_s0 = scalar_lea.sflag [#allocation3], %s665_s27 }
  0x4f   : > { %p4341_p4 = pneg %p4696_p11 }
  0x51   : > { %s5393_s7 = smov %s5392_s4  ;;  %s4694_s21 = scalar_lea.hbm %s5392_s4, %s3660_s2 }
  0x52   : > { %s4339_s24 = scalar_lea.hbm %s4694_s21, 128  ;;  %s4344_s22 = scalar_lea.hbm %s5393_s7, 256 }
  0x53   : > { %p4340_p9 = scmp.ne.s32.totalorder %s4694_s21, %s4339_s24  ;;  %p4345_p7 = scmp.lt.s32.totalorder %s4694_s21, %s5393_s7 }
  0x54   : > { %p4346_p12 = scmp.lt.s32.totalorder %s4344_s22, %s4339_s24 }
  0x55   : > { %p4342_p6 = pnand %p4341_p4, %p4340_p9 }
  0x56   : > { %p4347_p10 = por %p4346_p12, %p4345_p7 }
  0x57   : > { %p4343_p3 = pneg %p4342_p6 }
  0x59   : > { %p4348_p13 = pnand %p4347_p10, %p4343_p3 }
  0x5b   : > { %4351 = shalt.err (!%p4348_p13)
}
  0x5c   : > { %s4352_s29 = scalar_lea.vmem %s677_s3, 128  ;;  %s4444_s27 = smov [#allocation2]  }
  0x5d   : > { %p4353_p0 = scmp.ne.s32.totalorder %s677_s3, %s4352_s29  ;;  %s4357_s25 = sshll.u32 %s4444_s27, 4  ;;  %s4358_s25 = int_to_ptr.vmem [resolvable:$false] %s4357_s25 }
  0x5e   : > { %s4359_s20 = scalar_lea.vmem %s4358_s25, 256  ;;  %p4360_p9 = scmp.lt.s32.totalorder %s677_s3, %s4358_s25 }
  0x5f   : > { %p4355_p5 = pnand %p4353_p0, %p4341_p4  ;;  %p4361_p6 = scmp.lt.s32.totalorder %s4359_s20, %s4352_s29 }
  0x61   : > { %p4356_p1 = pneg %p4355_p5  ;;  %p4362_p2 = por %p4361_p6, %p4360_p9 }
  0x63   : > { %p4363_p8 = pnand %p4362_p2, %p4356_p1 }
  0x65   : > { %4366 = shalt.err (!%p4363_p8)
}
  0x66   : > { %4143 = dma.hbm_to_vmem [thread:$0]  (!%p4696_p11), %s4694_s21, 128, %s677_s3, %s666_s0  }
  0x67   : > { %p5395_p3 = scmp.ne.s32.totalorder %s5382_s6, 0 }
  0x68   : > { %s4717_s24 = sand.u32 (!%p5395_p3), 1, %s4431_s30   ;;  %p5396_p8 = scmp.ne.s32.totalorder (!%p5395_p3), %s5379_s26, 0 }
  0x69   : > { %692 = sbr.rel (%p5395_p3) target bundleno = 5423 (0x152f), region = 112  ;;  %s5351_s2 = sshll.u32 (!%p5395_p3), %s4717_s24, 3 }
  0x6a   : > { %s695_s25 = scalar_lea.sflag (!%p5395_p3), [#allocation3], %s4717_s24  ;;  %s4723_s20 = scalar_lea.vmem (!%p5395_p3), [#allocation2], %s5351_s2 }
  0x6e   : > { %4410 = dma.done.wait (%p5396_p8), %s695_s25, 128  }
  0x6f   : > { %4412 = vsyncadd (%p5396_p8), %s695_s25, 4294967168  ;;  %p5397_p2 = scmp.eq.s32.totalorder %s4604_s5, 0 }
  0x71   : > { %4414 = dma.done.wait (%p5397_p2), [#allocation6], 80   ;;  %p5398_p11 = pmov %p5397_p2 }
  0x72   : > { %p5399_p4 = pmov %p5397_p2 }
  0x73   : > { %4416 = vsyncadd (%p5398_p11), [#allocation6], 4294967216 }
  0x74   : > { %4418 = dma.done.wait (%p5399_p4), [#allocation9], 16   ;;  %p5400_p7 = pmov %p5397_p2 }
  0x75   : > { %p777_p12 = scmp.lt.s32.totalorder %s4604_s5, 1  ;;  %v4445_v0 = vmov 0.0   ;;  %vm4446_vm0 = vmmov 0   ;;  %vm795_vm1 = vcmask 1043456   ;;  %s5401_s0 = sld [smem:[#allocation23_spill]]  ;;  %vm791_vm2 = vcmask 31744  }
  0x76   : > { %4420 = vsyncadd (%p5400_p7), [#allocation9], 4294967280  ;;  %3873 = vmatprep.subr.mxu0 %v4445_v0  ;;  %3875 = vmatprep.mubr.msk.f32.mxu0 %vm4446_vm0, %v4445_v0  ;;  %v783_v1 = vld [vmem:[#allocation5] sm:$0xf]  ;;  %s5402_s4 = sld [smem:[#allocation26_spill]]  ;;  %vm885_vm3 = vcmask 523264   ;;  %v995_v52 = vlaneseq }
  0x77   : > { %s778_s26 = scalar_select %p777_p12, %s4604_s5, 1  ;;  %3878 = vmatprep.subr.mxu1 %v4445_v0  ;;  %3894 = vmatprep.mubr.msk.f32.mxu1 %vm4446_vm0, %v4445_v0  ;;  %v3668_v12 = vld [vmem:[#allocation7] ss:$0 sm:$0xff]  ;;  %v3671_v20 = vld [vmem:[#allocation8] ss:$0 sm:$0xff]  ;;  %v4806_v21 = vld [vmem:[%s4723_s20] sm:$0xff] }
  0x78   : > { %3874 = vmatpush3.msk.msra.mxu0 %vm795_vm1, %v783_v1  ;;  %vm1067_vm4 = vcmask 261120   ;;  %v4447_v26 = vmov 1   ;;  %v4448_v27 = vmov 0   ;;  %v1144_v28 = vld [vmem:[%s5316_s8 + $0x18] sm:$0xff]  ;;  %v1143_v29 = vld [vmem:[%s5316_s8 + $0x10] sm:$0xff]  ;;  %v1142_v30 = vld [vmem:[%s5316_s8 + $0x8] sm:$0xff] }
  0x79   : > { %s3667_s6 = sshll.u32 %s778_s26, 3  ;;  %3897 = vmatprep.subr.mxu0 %v4445_v0  ;;  %4209 = vset.pattern.permute.xlu1 %v4447_v26  ;;  %v1141_v31 = vld [vmem:[%s5316_s8] sm:$0xff]  ;;  %s5405_s23 = sld [smem:[#allocation29_spill]]  ;;  %v4457_v37 = vmov 3   ;;  %vm1239_vm5 = vcmask 64512   ;;  %v4458_v50 = vmov 2  }
  0x7a   : > { %4208 = vset.pattern.permute.xlu0 %v4448_v27  ;;  %s4449_s22 = smov 120   ;;  %s4450_s20 = smov 96   ;;  %v3677_v36 = vld [vmem:[%s5320_s12] ss:$0 sm:$0xff]  ;;  %v996_v55 = vshrl.u32 %v995_v52, 7  ;;  %vm1922_vm8 = vcmask 130048  }
  0x7b   : > { %s780_s3 = scalar_lea.vmem %s5401_s0, %s3667_s6  ;;  %s5404_s6 = sld [smem:[#allocation28_spill]]  ;;  %v3675_v46 = vld [vmem:[%s5317_s9] ss:$0 sm:$0xff]  ;;  %vm1924_vm9 = vcmask 195584  }
  0x7c   : > { %v4748_v2 = vld [vmem:[%s780_s3] sm:$0xff]  ;;  %s5403_s1 = smov %s5402_s4  ;;  %v877_v3 = vld [vmem:[%s5402_s4 + $0x38] sm:$0xff]  ;;  %s5354_s4 = smov 80   ;;  %v997_v57 = vsub.s32 0, %v996_v55 }
  0x7d   : > { %3879 = vmatpush3.msra.mxu1 %v877_v3  ;;  %v876_v4 = vld [vmem:[%s5403_s1 + $0x30] sm:$0xff]  ;;  %3876 = vmatmul.mubr.msk.f32.vlgmr.msra.gmra.mxu0 %vm791_vm2, %v4748_v2  ;;  %v875_v5 = vld [vmem:[%s5403_s1 + $0x28] sm:$0xff]  ;;  %v874_v6 = vld [vmem:[%s5403_s1 + $0x20] sm:$0xff]  ;;  %s4452_s29 = smov 88   ;;  %s5352_s27 = smov 112  }
  0x7e   : > { %3880 = vmatprep.subr.mxu1 %v4445_v0  ;;  %3905 = vmatprep.mubr.msk.f32.mxu0 %vm4446_vm0, %v4445_v0  ;;  %v873_v7 = vld [vmem:[%s5403_s1 + $0x18] sm:$0xff]  ;;  %v872_v8 = vld [vmem:[%s5403_s1 + $0x10] sm:$0xff]  ;;  %v871_v9 = vld [vmem:[%s5403_s1 + $0x8] sm:$0xff]  ;;  %s4454_s25 = smov 72   ;;  %s4455_s26 = smov 127  }
  0x7f   : > { %3881 = vmatpush3.msra.mxu1 %v876_v4  ;;  %v870_v10 = vld [vmem:[%s5403_s1] sm:$0xff]  ;;  %s5358_s21 = smov 104   ;;  %s5357_s0 = smov 8  }
  0x80   : > { %3882 = vmatprep.subr.mxu1 %v4445_v0  ;;  %v3673_v32 = vld [vmem:[%s5405_s23] ss:$0 sm:$0xff]  ;;  %s5356_s2 = smov 16   ;;  %s5408_s28 = smov 80  }
  0x81   : > { %3883 = vmatpush3.msra.mxu1 %v875_v5  ;;  %v1059_v11 = vld [vmem:[%s5404_s6 + $0x18] sm:$0xff]  ;;  %v1058_v17 = vld [vmem:[%s5404_s6 + $0x10] sm:$0xff]  ;;  %v1057_v18 = vld [vmem:[%s5404_s6 + $0x8] sm:$0xff]  ;;  %s5415_s3 = sld [smem:[#allocation32_spill]] }
  0x82   : > { %3884 = vmatprep.subr.mxu1 %v4445_v0  ;;  %3898 = vmatpush3.msra.mxu0 %v1059_v11  ;;  %v1056_v19 = vld [vmem:[%s5404_s6] sm:$0xff]  ;;  %s5417_s7 = sld [smem:[#allocation33_spill]] }
  0x83   : > { %3885 = vmatpush3.msra.mxu1 %v874_v6  ;;  %3899 = vmatprep.subr.mxu0 %v4445_v0 }
  0x84   : > { %3886 = vmatprep.subr.mxu1 %v4445_v0  ;;  %3900 = vmatpush3.msra.mxu0 %v1058_v17 }
  0x85   : > { %3887 = vmatpush3.msra.mxu1 %v873_v7  ;;  %3901 = vmatprep.subr.mxu0 %v4445_v0 }
  0x86   : > { %3888 = vmatprep.subr.mxu1 %v4445_v0  ;;  %3902 = vmatpush3.msra.mxu0 %v1057_v18 }
  0x87   : > { %3889 = vmatpush3.msra.mxu1 %v872_v8  ;;  %3903 = vmatprep.subr.mxu0 %v4445_v0 }
  0x88   : > { %3890 = vmatprep.subr.mxu1 %v4445_v0  ;;  %3904 = vmatpush3.msra.mxu0 %v1056_v19 }
  0x89   : > { %3891 = vmatpush3.msra.mxu1 %v871_v9  ;;  %3908 = vmatprep.subr.mxu0 %v4445_v0 }
  0x8a   : > { %3892 = vmatprep.subr.mxu1 %v4445_v0 }
  0x8b   : > { %3893 = vmatpush3.msra.mxu1 %v870_v10 }
  0x8c   : > { %3929 = vmatprep.subr.mxu1 %v4445_v0 }
 0x13d   : > { %v865_v13 = vpop.f32.mrf.mxu0 }
 0x13e   : > { %v866_v14 = vadd.f32 %v3668_v12, %v865_v13 }
 0x13f   : > { %v3877_v15 = vpop.f32.mrf.mxu0 }
 0x140   : > { %v869_v16 = vmax.f32 %v866_v14, 0.0 }
 0x142   : > { %3895 = vmatmul.mubr.msk.f32.vlgmr.msra.gmra.mxu1 %vm885_vm3, %v869_v16 }
 0x143   : > { %3931 = vmatprep.mubr.msk.f32.mxu1 %vm4446_vm0, %v4445_v0 }
 0x202   : > { %v955_v22 = vpop.f32.mrf.mxu1 }
 0x203   : > { %v4808_v23 = vadd.f32 %v3671_v20, %v955_v22 }
 0x204   : > { %v3896_v24 = vpop.f32.mrf.mxu1 }
 0x205   : > { %v1055_v25 = vadd.f32 %v4808_v23, %v4806_v21 }
 0x207   : > { %3906 = vmatmul.mubr.msk.f32.vlgmr.msra.gmra.mxu0 %vm1067_vm4, %v1055_v25 }
 0x208   : > { %3916 = vmatprep.mubr.msk.f32.mxu0 %vm4446_vm0, %v4445_v0  ;;  %3909 = vmatpush3.msra.mxu0 %v1144_v28 }
 0x209   : > { %3910 = vmatprep.subr.mxu0 %v4445_v0 }
 0x20a   : > { %3911 = vmatpush3.msra.mxu0 %v1143_v29 }
 0x20b   : > { %3912 = vmatprep.subr.mxu0 %v4445_v0 }
 0x20c   : > { %3913 = vmatpush3.msra.mxu0 %v1142_v30 }
 0x20d   : > { %3914 = vmatprep.subr.mxu0 %v4445_v0 }
 0x20e   : > { %3915 = vmatpush3.msra.mxu0 %v1141_v31 }
 0x20f   : > { %3917 = vmatmul.mubr.msk.f32.vlgmr.msra.gmra.mxu0 %vm1067_vm4, %v4806_v21  ;;  %3919 = vmatprep.subr.mxu0 %v4445_v0 }
 0x210   : > { %3921 = vmatprep.mubr.msk.f32.mxu0 %vm4446_vm0, %v4445_v0 }
 0x2c7   : > { %v1137_v33 = vpop.f32.mrf.mxu0 }
 0x2c8   : > { %v1138_v34 = vadd.f32 %v3673_v32, %v1137_v33 }
 0x2c9   : > { %v3907_v35 = vpop.f32.mrf.mxu0 }
 0x2ca   : > { %1319 = vrot.lane.b32.xlu1 %v1138_v34, %s4449_s22  ;;  %1237 = vrot.lane.b32.xlu0 %v1138_v34, %s4450_s20 }
 0x2ce   : > { %1404 = vrot.lane.b32.xlu1 %v1138_v34, %s5354_s4  ;;  %1321 = vrot.lane.b32.xlu0 %v1138_v34, %s4452_s29 }
 0x2cf   : > { %v1221_v47 = vpop.f32.mrf.mxu0 }
 0x2d0   : > { %v4878_v48 = vadd.f32 %v3675_v46, %v1221_v47 }
 0x2d1   : > { %v3918_v49 = vpop.f32.mrf.mxu0 }
 0x2d2   : > { %1402 = vrot.lane.b32.xlu1 %v1138_v34, %s5352_s27  ;;  %1487 = vrot.lane.b32.xlu0 %v1138_v34, %s4454_s25 }
 0x2d6   : > { %1000 = vrot.lane.b32.xlu1 %v4748_v2, %s4455_s26  ;;  %1485 = vrot.lane.b32.xlu0 %v1138_v34, %s5358_s21  ;;  %s5407_s26 = smov 104  }
 0x2da   : > { %1036 = vperm.xlu1 %4209, %v4748_v2   ;;  %992 = vperm.xlu0 %4208, %v4748_v2  }
 0x2de   : > { %4210 = vset.pattern.permute.xlu1 %v4448_v27 }
 0x2df   : > { %1232 = vperm.xlu1 %4210, %v3677_v36  }
 0x308   : > { %959 = vxpose.xlu1.b32.start.end [1/1] (short) (narrow) %v4748_v2, 8 }
 0x326   : > { %4213 = vset.pattern.permute.xlu1 %v4457_v37 }
 0x327   : > { %1481 = vperm.xlu1 %4213, %v3677_v36  }
 0x32b   : > { %4214 = vset.pattern.permute.xlu1 %v4448_v27 }
 0x33c   : > { %v1320_v38 = vpop.permute.xlu1 %1319  ;;  %v1238_v39 = vpop.permute.xlu0 %1237 }
 0x33d   : > { %3920 = vmatpush3.xpose.msk.msra.mxu0 %vm1239_vm5, %v1238_v39 }
 0x33e   : > { %3924 = vmatprep.subr.mxu0 %v4445_v0 }
 0x340   : > { %v1405_v40 = vpop.permute.xlu1 %1404  ;;  %3922 = vmatmul.mubr.msk.f32.vlgmr.msra.gmra.mxu0 %vm1239_vm5, %v1138_v34  ;;  %v1322_v41 = vpop.permute.xlu0 %1321 }
 0x341   : > { %3925 = vmatpush3.xpose.msk.msra.mxu0 %vm1239_vm5, %v1322_v41  ;;  %3930 = vmatpush3.xpose.msk.msra.mxu1 %vm1239_vm5, %v1405_v40 }
 0x342   : > { %3926 = vmatprep.mubr.msk.f32.mxu0 %vm4446_vm0, %v4445_v0  ;;  %3934 = vmatprep.subr.mxu0 %v4445_v0 }
 0x343   : > { %3939 = vmatprep.subr.mxu1 %v4445_v0 }
 0x344   : > { %v1403_v42 = vpop.permute.xlu1 %1402  ;;  %3927 = vmatmul.mubr.msk.f32.vlgmr.msra.gmra.mxu0 %vm1239_vm5, %v1320_v38  ;;  %v1488_v43 = vpop.permute.xlu0 %1487 }
 0x345   : > { %3932 = vmatmul.mubr.msk.f32.vlgmr.msra.gmra.mxu1 %vm1239_vm5, %v1403_v42  ;;  %3935 = vmatpush3.xpose.msk.msra.mxu0 %vm1239_vm5, %v1488_v43 }
 0x346   : > { %3936 = vmatprep.mubr.msk.f32.mxu0 %vm4446_vm0, %v4445_v0  ;;  %3944 = vmatprep.subr.mxu0 %v4445_v0 }
 0x347   : > { %3941 = vmatprep.mubr.msk.f32.mxu1 %vm4446_vm0, %v4445_v0  ;;  %3940 = vmatpush3.msra.mxu1 %v4878_v48 }
 0x348   : > { %v1001_v44 = vpop.permute.xlu1 %1000  ;;  %v1486_v45 = vpop.permute.xlu0 %1485  ;;  %3949 = vmatprep.subr.mxu1 %v4445_v0 }
 0x349   : > { %1003 = vxpose.xlu0.b32.start.end [1/1] (short) (narrow) %v1001_v44, 8  ;;  %3937 = vmatmul.mubr.msk.f32.vlgmr.msra.gmra.mxu0 %vm1239_vm5, %v1486_v45 }
 0x34a   : > { %3946 = vmatprep.mubr.msk.f32.mxu0 %vm4446_vm0, %v4445_v0 }
 0x355   : > { %v1037_v51 = vpop.permute.xlu1 %1036  ;;  %v993_v54 = vpop.permute.xlu0 %992 }
 0x35a   : > { %v1233_v53 = vpop.permute.xlu1 %1232 }
 0x372   : > { %4211 = vset.pattern.permute.xlu0 %v4447_v26 }
 0x373   : > { %1315 = vperm.xlu0 %4211, %v3677_v36  }
 0x377   : > { %4212 = vset.pattern.permute.xlu0 %v4458_v50 }
 0x378   : > { %1398 = vperm.xlu0 %4212, %v3677_v36  }
 0x37c   : > { %4215 = vset.pattern.permute.xlu0 %v4447_v26 }
 0x384   : > { %v975_v58 = vpop.trf.xlu1 }
 0x385   : > { %v998_v60 = vrot.slane %v975_v58, %v997_v57 }
 0x387   : > { %v999_v62 = vsub.f32 %v993_v54, %v998_v60 }
 0x389   : > { %v1044_v1 = vmul.f32 %v999_v62, %v999_v62 }
 0x3a2   : > { %v1482_v19 = vpop.permute.xlu1 %1481 }
 0x3c5   : > { %v1019_v56 = vpop.trf.xlu0 }
 0x3c6   : > { %v1042_v59 = vrot.slane %v1019_v56, %v997_v57 }
 0x3c8   : > { %v1043_v61 = vsub.f32 %v1037_v51, %v1042_v59 }
 0x3ca   : > { %v1045_v63 = vmul.f32 %v1043_v61, %v1043_v61 }
 0x3cc   : > { %v1046_v2 = vadd.f32 %v1045_v63, %v1044_v1 }
 0x3ce   : > { %4219 = vrsqrt.f32 %v1046_v2  ;;  %vm1049_vm6 = vcmp.eq.f32.partialorder %v1046_v2, inf  ;;  %v1052_v6 = vand.u32 2147483648, %v1046_v2  ;;  %vm1051_vm7 = vcmp.eq.f32.partialorder %v1046_v2, 0.0 }
 0x3db   : > { %v4220_v3 = vpop.eup %4219 }
 0x3dc   : > { %v1048_v4 = vmul.f32 %v4220_v3, %v1046_v2 }
 0x3de   : > { %v1050_v5 = vsel %vm1049_vm6, %v1046_v2, %v1048_v4 }
 0x3df   : > { %v1053_v7 = vsel %vm1051_vm7, %v1052_v6, %v1050_v5 }
 0x3e0   : > { %v4884_v8 = vsub.f32 0.0, %v1053_v7 }
 0x3e2   : > { %v1235_v10 = vmul.f32 %v1233_v53, %v4884_v8  ;;  %v1484_v28 = vmul.f32 %v1482_v19, %v4884_v8 }
 0x3ee   : > { %v1316_v9 = vpop.permute.xlu0 %1315 }
 0x3ef   : > { %v1318_v15 = vmul.f32 %v1316_v9, %v4884_v8  ;;  %v1929_v9 = vld [vmem:[%s5318_s10 + $0x18] sm:$0xff] }
 0x3f3   : > { %v1399_v12 = vpop.permute.xlu0 %1398 }
 0x3f4   : > { %v1401_v17 = vmul.f32 %v1399_v12, %v4884_v8  ;;  %v1926_v12 = vld [vmem:[%s5318_s10] sm:$0xff] }
 0x400   : > { %v1310_v11 = vpop.f32.mrf.mxu0 }
 0x401   : > { %v1311_v13 = vadd.f32 %v1310_v11, %v1235_v10  ;;  %v1928_v10 = vld [vmem:[%s5318_s10 + $0x10] sm:$0xff]  ;;  %v1927_v11 = vld [vmem:[%s5318_s10 + $0x8] sm:$0xff] }
 0x402   : > { %v3923_v14 = vpop.f32.mrf.mxu0 }
 0x403   : > { %v1563_v16 = vsel %vm1239_vm5, %v1311_v13, -inf }
 0x404   : > { %1564 = vmax.xlane.f32.xlu1 %v1563_v16  ;;  %v1393_v18 = vpop.f32.mrf.mxu0 }
 0x405   : > { %v1394_v20 = vadd.f32 %v1393_v18, %v1318_v15  ;;  %v1476_v22 = vpop.f32.mrf.mxu1 }
 0x406   : > { %v1477_v24 = vadd.f32 %v1476_v22, %v1401_v17  ;;  %v3928_v25 = vpop.f32.mrf.mxu0 }
 0x407   : > { %v3933_v26 = vpop.f32.mrf.mxu1  ;;  %v1566_v27 = vsel %vm1239_vm5, %v1394_v20, -inf }
 0x408   : > { %1567 = vmax.xlane.f32.xlu0 %v1566_v27  ;;  %v1569_v29 = vsel %vm1239_vm5, %v1477_v24, -inf }
 0x409   : > { %1570 = vmax.xlane.f32.xlu1 %v1569_v29  ;;  %v1559_v30 = vpop.f32.mrf.mxu0  ;;  %v3690_v29 = vld [vmem:[%s5319_s11] ss:$0 sm:$0xff] }
 0x40a   : > { %v1560_v31 = vadd.f32 %v1559_v30, %v1484_v28 }
 0x40b   : > { %v3938_v32 = vpop.f32.mrf.mxu0 }
 0x40c   : > { %v1572_v33 = vsel %vm1239_vm5, %v1560_v31, -inf }
 0x40d   : > { %1573 = vmax.xlane.f32.xlu0 %v1572_v33 }
 0x41a   : > { %1681 = vrot.lane.b32.xlu1 %v4878_v48, %s4449_s22 }
 0x48d   : > { %v1565_v34 = vpop.xlane.xlu1 %1564 }
 0x48e   : > { %v1575_v35 = vsub.f32 %v1311_v13, %v1565_v34 }
 0x490   : > { %v1579_v36 = vmul.f32 1.442695, %v1575_v35 }
 0x491   : > { %v1568_v38 = vpop.xlane.xlu0 %1567 }
 0x492   : > { %4221 = vpow2.f32 %v1579_v36  ;;  %v1576_v39 = vsub.f32 %v1394_v20, %v1568_v38  ;;  %v1571_v40 = vpop.xlane.xlu1 %1570 }
 0x493   : > { %v1577_v41 = vsub.f32 %v1477_v24, %v1571_v40 }
 0x494   : > { %v1581_v42 = vmul.f32 1.442695, %v1576_v39 }
 0x495   : > { %v1583_v43 = vmul.f32 1.442695, %v1577_v41  ;;  %v2044_v41 = vld [vmem:[%s5323_s15 + $0x18] sm:$0xff] }
 0x496   : > { %4223 = vpow2.f32 %v1581_v42  ;;  %v1682_v44 = vpop.permute.xlu1 %1681  ;;  %v1574_v45 = vpop.xlane.xlu0 %1573  ;;  %v2043_v42 = vld [vmem:[%s5323_s15 + $0x10] sm:$0xff] }
 0x497   : > { %4225 = vpow2.f32 %v1583_v43  ;;  %v1578_v46 = vsub.f32 %v1560_v31, %v1574_v45  ;;  %3945 = vmatpush3.msra.mxu0 %v1682_v44  ;;  %v2041_v43 = vld [vmem:[%s5323_s15] sm:$0xff]  ;;  %v2133_v44 = vld [vmem:[%s5325_s17 + $0x38] sm:$0xff]  ;;  %v2132_v45 = vld [vmem:[%s5325_s17 + $0x30] sm:$0xff] }
 0x498   : > { %3954 = vmatprep.subr.mxu0 %v4445_v0 }
 0x499   : > { %v1585_v47 = vmul.f32 1.442695, %v1578_v46  ;;  %v2131_v46 = vld [vmem:[%s5325_s17 + $0x28] sm:$0xff] }
 0x49b   : > { %4227 = vpow2.f32 %v1585_v47  ;;  %v2130_v47 = vld [vmem:[%s5325_s17 + $0x20] sm:$0xff] }
 0x49f   : > { %v4222_v49 = vpop.eup %4221 }
 0x4a0   : > { %v1587_v51 = vsel %vm1239_vm5, %v4222_v49, 0.0 }
 0x4a1   : > { %1588 = vadd.xlane.f32.xlu1 %v1587_v51 }
 0x4a3   : > { %v4224_v52 = vpop.eup %4223 }
 0x4a4   : > { %v4226_v53 = vpop.eup %4225  ;;  %v1590_v54 = vsel %vm1239_vm5, %v4224_v52, 0.0 }
 0x4a5   : > { %1591 = vadd.xlane.f32.xlu0 %v1590_v54  ;;  %v1593_v55 = vsel %vm1239_vm5, %v4226_v53, 0.0 }
 0x4a6   : > { %1594 = vadd.xlane.f32.xlu1 %v1593_v55  ;;  %v3692_v55 = vld [vmem:[%s5321_s13] ss:$0 sm:$0xff] }
 0x4a8   : > { %v4228_v56 = vpop.eup %4227 }
 0x4a9   : > { %v1596_v57 = vsel %vm1239_vm5, %v4228_v56, 0.0 }
 0x4aa   : > { %1597 = vadd.xlane.f32.xlu0 %v1596_v57  ;;  %v3693_v57 = vld [vmem:[%s5322_s14] ss:$0 sm:$0xff] }
 0x4b7   : > { %1833 = vrot.lane.b32.xlu1 %v4878_v48, %s5358_s21  ;;  %s5409_s21 = smov 112  }
 0x4c0   : > { %1757 = vrot.lane.b32.xlu0 %v4878_v48, %s5352_s27  ;;  %s5355_s27 = smov 24  }
 0x52a   : > { %v1589_v58 = vpop.xlane.xlu1 %1588 }
 0x52b   : > { %4229 = vrcp.f32 %v1589_v58 }
 0x52e   : > { %v1592_v59 = vpop.xlane.xlu0 %1591 }
 0x52f   : > { %4231 = vrcp.f32 %v1592_v59  ;;  %v1595_v60 = vpop.xlane.xlu1 %1594 }
 0x530   : > { %4233 = vrcp.f32 %v1595_v60  ;;  %v2128_v60 = vld [vmem:[%s5325_s17 + $0x10] sm:$0xff] }
 0x533   : > { %v1598_v61 = vpop.xlane.xlu0 %1597  ;;  %v1834_v5 = vpop.permute.xlu1 %1833 }
 0x534   : > { %4235 = vrcp.f32 %v1598_v61  ;;  %v2127_v61 = vld [vmem:[%s5325_s17 + $0x8] sm:$0xff] }
 0x537   : > { %v1758_v1 = vpop.permute.xlu0 %1757 }
 0x538   : > { %v4230_v62 = vpop.eup %4229 }
 0x539   : > { %v1603_v63 = vmul.f32 %v4230_v62, %v4222_v49  ;;  %v2129_v49 = vld [vmem:[%s5325_s17 + $0x18] sm:$0xff]  ;;  %v2126_v62 = vld [vmem:[%s5325_s17] sm:$0xff] }
 0x53b   : > { %3942 = vmatmul.mubr.msk.f32.vlgmr.msra.gmra.mxu1 %vm1239_vm5, %v1603_v63  ;;  %v3694_v63 = vld [vmem:[%s5324_s16] ss:$0 sm:$0xff] }
 0x53c   : > { %v4232_v2 = vpop.eup %4231  ;;  %3950 = vmatpush3.msra.mxu1 %v1758_v1  ;;  %3951 = vmatprep.mubr.msk.f32.mxu1 %vm4446_vm0, %v4445_v0 }
 0x53d   : > { %v4234_v3 = vpop.eup %4233  ;;  %v1604_v48 = vmul.f32 %v4232_v2, %v4224_v52  ;;  %3959 = vmatprep.subr.mxu1 %v4445_v0 }
 0x53e   : > { %v1605_v4 = vmul.f32 %v4234_v3, %v4226_v53 }
 0x53f   : > { %3947 = vmatmul.mubr.msk.f32.vlgmr.msra.gmra.mxu0 %vm1239_vm5, %v1604_v48 }
 0x540   : > { %3955 = vmatpush3.msra.mxu0 %v1834_v5  ;;  %3952 = vmatmul.mubr.msk.f32.vlgmr.msra.gmra.mxu1 %vm1239_vm5, %v1605_v4  ;;  %v3696_v4 = vld [vmem:[%s5326_s18] ss:$0 sm:$0xff] }
 0x541   : > { %v4236_v6 = vpop.eup %4235  ;;  %3956 = vmatprep.mubr.msk.f32.mxu0 %vm4446_vm0, %v4445_v0  ;;  %3967 = vmatprep.mubr.msk.f32.mxu1 %vm4446_vm0, %v4445_v0 }
 0x542   : > { %v1606_v7 = vmul.f32 %v4236_v6, %v4228_v56  ;;  %3970 = vmatprep.subr.mxu0 %v4445_v0  ;;  %3960 = vmatpush3.msra.mxu1 %v1929_v9 }
 0x543   : > { %3961 = vmatprep.subr.mxu1 %v4445_v0 }
 0x544   : > { %3957 = vmatmul.mubr.msk.f32.vlgmr.msra.gmra.mxu0 %vm1239_vm5, %v1606_v7  ;;  %3962 = vmatpush3.msra.mxu1 %v1928_v10 }
 0x545   : > { %3978 = vmatprep.mubr.msk.f32.mxu0 %vm4446_vm0, %v4445_v0  ;;  %3963 = vmatprep.subr.mxu1 %v4445_v0 }
 0x546   : > { %3964 = vmatpush3.msra.mxu1 %v1927_v11  ;;  %3971 = vmatpush3.msra.mxu0 %v2044_v41 }
 0x547   : > { %3965 = vmatprep.subr.mxu1 %v4445_v0  ;;  %3972 = vmatprep.subr.mxu0 %v4445_v0 }
 0x548   : > { %3966 = vmatpush3.msra.mxu1 %v1926_v12  ;;  %3973 = vmatpush3.msra.mxu0 %v2043_v42  ;;  %v3715_v42 = vld [vmem:[%s5320_s12 + $0x1] ss:$0 sm:$0xff] }
 0x549   : > { %3981 = vmatprep.subr.mxu1 %v4445_v0  ;;  %3974 = vmatprep.subr.mxu0 %v4445_v0 }
 0x5fb   : > { %v1676_v13 = vpop.f32.mrf.mxu1 }
 0x5fd   : > { %v3943_v14 = vpop.f32.mrf.mxu1 }
 0x5ff   : > { %v1753_v15 = vpop.f32.mrf.mxu0 }
 0x600   : > { %v1829_v16 = vpop.f32.mrf.mxu1  ;;  %1910 = vrot.lane.b32.xlu1 %v1753_v15, %s5357_s0  ;;  %s3529_s0 = scalar_lea.sflag [#allocation4], %s4717_s24 }
 0x601   : > { %1914 = vrot.lane.b32.xlu0 %v1829_v16, %s5356_s2  ;;  %v3948_v17 = vpop.f32.mrf.mxu0  ;;  %v3703_v16 = vld [vmem:[%s5404_s6 + $0x38] sm:$0xff]  ;;  %s5406_s2 = sld [smem:[#allocation30_spill]] }
 0x602   : > { %v3953_v18 = vpop.f32.mrf.mxu1  ;;  %v3702_v17 = vld [vmem:[%s5404_s6 + $0x30] sm:$0xff] }
 0x603   : > { %v3701_v18 = vld [vmem:[%s5404_s6 + $0x28] sm:$0xff] }
 0x604   : > { %v1905_v19 = vpop.f32.mrf.mxu0 }
 0x605   : > { %1918 = vrot.lane.b32.xlu1 %v1905_v19, %s5355_s27  ;;  %v3700_v19 = vld [vmem:[%s5404_s6 + $0x20] sm:$0xff]  ;;  %s5413_s27 = sld [smem:[#allocation31_spill]] }
 0x606   : > { %v3958_v20 = vpop.f32.mrf.mxu0 }
 0x672   : > { %v1911_v22 = vpop.permute.xlu1 %1910 }
 0x673   : > { %v1921_v24 = vsel %vm1239_vm5, %v1676_v13, %v1911_v22  ;;  %v1915_v25 = vpop.permute.xlu0 %1914 }
 0x674   : > { %v1923_v26 = vsel %vm1922_vm8, %v1921_v24, %v1915_v25 }
 0x677   : > { %v1919_v27 = vpop.permute.xlu1 %1918 }
 0x678   : > { %v1925_v28 = vsel %vm1924_vm9, %v1923_v26, %v1919_v27  ;;  %v3698_v26 = vld [vmem:[%s5327_s19] ss:$0 sm:$0xff] }
 0x679   : > { %3968 = vmatmul.mubr.msk.f32.vlgmr.msra.gmra.mxu1 %vm1067_vm4, %v1925_v28  ;;  %v3699_v28 = vld [vmem:[%s5406_s2] ss:$0 sm:$0xff] }
 0x67a   : > { %3997 = vmatprep.mubr.msk.f32.mxu1 %vm4446_vm0, %v4445_v0  ;;  %3982 = vmatpush3.msra.mxu1 %v2133_v44 }
 0x67b   : > { %3983 = vmatprep.subr.mxu1 %v4445_v0 }
 0x67c   : > { %3984 = vmatpush3.msra.mxu1 %v2132_v45 }
 0x67d   : > { %3985 = vmatprep.subr.mxu1 %v4445_v0 }
 0x67e   : > { %3986 = vmatpush3.msra.mxu1 %v2131_v46  ;;  %v3712_v46 = vld [vmem:[%s5317_s9 + $0x1] ss:$0 sm:$0xff] }
 0x67f   : > { %3987 = vmatprep.subr.mxu1 %v4445_v0 }
 0x680   : > { %3988 = vmatpush3.msra.mxu1 %v2130_v47 }
 0x681   : > { %3989 = vmatprep.subr.mxu1 %v4445_v0 }
 0x682   : > { %3990 = vmatpush3.msra.mxu1 %v2129_v49 }
 0x683   : > { %3991 = vmatprep.subr.mxu1 %v4445_v0 }
 0x684   : > { %3992 = vmatpush3.msra.mxu1 %v2128_v60 }
 0x685   : > { %3993 = vmatprep.subr.mxu1 %v4445_v0 }
 0x686   : > { %3994 = vmatpush3.msra.mxu1 %v2127_v61 }
 0x687   : > { %3995 = vmatprep.subr.mxu1 %v4445_v0 }
 0x688   : > { %3996 = vmatpush3.msra.mxu1 %v2126_v62 }
 0x689   : > { %4022 = vmatprep.subr.mxu1 %v4445_v0 }
 0x739   : > { %v2006_v30 = vpop.f32.mrf.mxu1 }
 0x73a   : > { %v2007_v31 = vadd.f32 %v3690_v29, %v2006_v30 }
 0x73b   : > { %v3969_v32 = vpop.f32.mrf.mxu1 }
 0x73c   : > { %v2010_v33 = vadd.f32 %v2007_v31, %v4806_v21  ;;  %v2042_v21 = vld [vmem:[%s5323_s15 + $0x8] sm:$0xff]  ;;  %v3710_v32 = vld [vmem:[%s5316_s8 + $0x38] sm:$0xff] }
 0x73d   : > { %3975 = vmatpush3.msra.mxu0 %v2042_v21 }
 0x73e   : > { %v2013_v34 = vsel %vm1067_vm4, %v2010_v33, 0.0  ;;  %3976 = vmatprep.subr.mxu0 %v4445_v0 }
 0x73f   : > { %2014 = vadd.xlane.f32.xlu0 %v2013_v34  ;;  %3977 = vmatpush3.msra.mxu0 %v2041_v43  ;;  %v3707_v34 = vld [vmem:[%s5316_s8 + $0x20] sm:$0xff] }
 0x740   : > { %4000 = vmatprep.subr.mxu0 %v4445_v0 }
 0x7c8   : > { %v2015_v35 = vpop.xlane.xlu0 %2014 }
 0x7c9   : > { %v2017_v36 = vmul.f32 0.03125, %v2015_v35  ;;  %v3705_v35 = vld [vmem:[%s5405_s23 + $0x1] ss:$0 sm:$0xff] }
 0x7cb   : > { %v2018_v38 = vsub.f32 %v2010_v33, %v2017_v36  ;;  %v3709_v33 = vld [vmem:[%s5316_s8 + $0x30] sm:$0xff] }
 0x7cd   : > { %v2019_v39 = vmul.f32 %v2018_v38, %v2018_v38 }
 0x7cf   : > { %v2020_v40 = vsel %vm1067_vm4, %v2019_v39, 0.0 }
 0x7d0   : > { %2021 = vadd.xlane.f32.xlu1 %v2020_v40 }
 0x859   : > { %v2022_v51 = vpop.xlane.xlu1 %2021 }
 0x85a   : > { %v2023_v52 = vmul.f32 0.03125, %v2022_v51 }
 0x85c   : > { %v2024_v53 = vadd.f32 1e-05, %v2023_v52 }
 0x85e   : > { %4237 = vrsqrt.f32 %v2024_v53 }
 0x86b   : > { %v4238_v54 = vpop.eup %4237 }
 0x86c   : > { %v2026_v56 = vmul.f32 %v4238_v54, %v2018_v38 }
 0x86e   : > { %v2033_v58 = vmul.f32 %v3692_v55, %v2026_v56 }
 0x870   : > { %v2040_v59 = vadd.f32 %v3693_v57, %v2033_v58 }
 0x872   : > { %3979 = vmatmul.mubr.msk.f32.vlgmr.msra.gmra.mxu0 %vm1067_vm4, %v2040_v59 }
 0x873   : > { %4008 = vmatprep.mubr.msk.f32.mxu0 %vm4446_vm0, %v4445_v0  ;;  %4001 = vmatpush3.msra.mxu0 %v3703_v16 }
 0x874   : > { %4002 = vmatprep.subr.mxu0 %v4445_v0 }
 0x875   : > { %4003 = vmatpush3.msra.mxu0 %v3702_v17 }
 0x876   : > { %4004 = vmatprep.subr.mxu0 %v4445_v0 }
 0x877   : > { %4005 = vmatpush3.msra.mxu0 %v3701_v18 }
 0x878   : > { %4006 = vmatprep.subr.mxu0 %v4445_v0 }
 0x879   : > { %4007 = vmatpush3.msra.mxu0 %v3700_v19 }
 0x87a   : > { %4011 = vmatprep.subr.mxu0 %v4445_v0 }
 0x932   : > { %v2121_v1 = vpop.f32.mrf.mxu0 }
 0x933   : > { %v2122_v2 = vadd.f32 %v3694_v63, %v2121_v1 }
 0x934   : > { %v3980_v3 = vpop.f32.mrf.mxu0 }
 0x935   : > { %v2125_v48 = vmax.f32 %v2122_v2, 0.0 }
 0x937   : > { %3998 = vmatmul.mubr.msk.f32.vlgmr.msra.gmra.mxu1 %vm885_vm3, %v2125_v48 }
 0x938   : > { %4024 = vmatprep.mubr.msk.f32.mxu1 %vm4446_vm0, %v4445_v0 }
 0x9f7   : > { %v2210_v5 = vpop.f32.mrf.mxu1 }
 0x9f8   : > { %v2211_v6 = vadd.f32 %v3696_v4, %v2210_v5 }
 0x9f9   : > { %v3999_v7 = vpop.f32.mrf.mxu1 }
 0x9fa   : > { %v2214_v9 = vadd.f32 %v2211_v6, %v2040_v59 }
 0x9fc   : > { %v2217_v10 = vsel %vm1067_vm4, %v2214_v9, 0.0 }
 0x9fd   : > { %2218 = vadd.xlane.f32.xlu0 %v2217_v10 }
 0xa86   : > { %v2219_v11 = vpop.xlane.xlu0 %2218 }
 0xa87   : > { %v2220_v12 = vmul.f32 0.03125, %v2219_v11 }
 0xa89   : > { %v2221_v13 = vsub.f32 %v2214_v9, %v2220_v12 }
 0xa8b   : > { %v2222_v14 = vmul.f32 %v2221_v13, %v2221_v13 }
 0xa8d   : > { %v2223_v15 = vsel %vm1067_vm4, %v2222_v14, 0.0 }
 0xa8e   : > { %2224 = vadd.xlane.f32.xlu0 %v2223_v15 }
 0xb17   : > { %v2225_v20 = vpop.xlane.xlu0 %2224 }
 0xb18   : > { %v2226_v22 = vmul.f32 0.03125, %v2225_v20 }
 0xb1a   : > { %v2227_v24 = vadd.f32 1e-05, %v2226_v22 }
 0xb1c   : > { %4239 = vrsqrt.f32 %v2227_v24 }
 0xb29   : > { %v4240_v25 = vpop.eup %4239 }
 0xb2a   : > { %v2229_v27 = vmul.f32 %v4240_v25, %v2221_v13 }
 0xb2c   : > { %v2236_v29 = vmul.f32 %v3698_v26, %v2229_v27 }
 0xb2e   : > { %v5040_v30 = vadd.f32 %v3699_v28, %v2236_v29 }
 0xb30   : > { %v2244_v31 = vadd.f32 %v5040_v30, %v4808_v23  ;;  %v3708_v23 = vld [vmem:[%s5316_s8 + $0x28] sm:$0xff] }
 0xb32   : > { %4009 = vmatmul.mubr.msk.f32.vlgmr.msra.gmra.mxu0 %vm1067_vm4, %v2244_v31 }
 0xb33   : > { %4012 = vmatpush3.msra.mxu0 %v3710_v32  ;;  %4019 = vmatprep.mubr.msk.f32.mxu0 %vm4446_vm0, %v4445_v0 }
 0xb34   : > { %4013 = vmatprep.subr.mxu0 %v4445_v0 }
 0xb35   : > { %4014 = vmatpush3.msra.mxu0 %v3709_v33 }
 0xb36   : > { %4015 = vmatprep.subr.mxu0 %v4445_v0 }
 0xb37   : > { %4016 = vmatpush3.msra.mxu0 %v3708_v23 }
 0xb38   : > { %4017 = vmatprep.subr.mxu0 %v4445_v0 }
 0xb39   : > { %4018 = vmatpush3.msra.mxu0 %v3707_v34 }
 0xb3a   : > { %4020 = vmatmul.mubr.msk.f32.vlgmr.msra.gmra.mxu0 %vm1067_vm4, %v5040_v30  ;;  %4027 = vmatprep.subr.mxu0 %v4445_v0 }
 0xb3b   : > { %4029 = vmatprep.mubr.msk.f32.mxu0 %vm4446_vm0, %v4445_v0 }
 0xbf2   : > { %v2327_v36 = vpop.f32.mrf.mxu0 }
 0xbf3   : > { %v2328_v38 = vadd.f32 %v3705_v35, %v2327_v36 }
 0xbf4   : > { %v4010_v39 = vpop.f32.mrf.mxu0 }
 0xbf5   : > { %2513 = vrot.lane.b32.xlu0 %v2328_v38, %s4452_s29  ;;  %2430 = vrot.lane.b32.xlu1 %v2328_v38, %s4450_s20  ;;  %s5411_s20 = smov 16   ;;  %s5412_s29 = smov 24  }
 0xbf9   : > { %2679 = vrot.lane.b32.xlu0 %v2328_v38, %s4454_s25  ;;  %2511 = vrot.lane.b32.xlu1 %v2328_v38, %s4449_s22 }
 0xbfa   : > { %v2413_v40 = vpop.f32.mrf.mxu0 }
 0xbfb   : > { %v5103_v47 = vadd.f32 %v3712_v46, %v2413_v40  ;;  %v3731_v46 = vld [vmem:[%s5318_s10 + $0x38] sm:$0xff] }
 0xbfc   : > { %v4021_v41 = vpop.f32.mrf.mxu0 }
 0xbfd   : > { %2677 = vrot.lane.b32.xlu0 %v2328_v38, %s5407_s26  ;;  %2596 = vrot.lane.b32.xlu1 %v2328_v38, %s5408_s28 }
 0xc01   : > { %2507 = vperm.xlu0 %4215, %v3715_v42   ;;  %2594 = vrot.lane.b32.xlu1 %v2328_v38, %s5409_s21 }
 0xc05   : > { %2425 = vperm.xlu1 %4214, %v3715_v42   ;;  %4218 = vset.pattern.permute.xlu0 %v4457_v37 }
 0xc09   : > { %4216 = vset.pattern.permute.xlu1 %v4458_v50 }
 0xc0a   : > { %2590 = vperm.xlu1 %4216, %v3715_v42  }
 0xc0e   : > { %4217 = vset.pattern.permute.xlu1 %v4457_v37 }
 0xc0f   : > { %2673 = vperm.xlu1 %4217, %v3715_v42  }
 0xc67   : > { %v2514_v21 = vpop.permute.xlu0 %2513  ;;  %v2431_v43 = vpop.permute.xlu1 %2430 }
 0xc68   : > { %4023 = vmatpush3.xpose.msk.msra.mxu1 %vm1239_vm5, %v2431_v43  ;;  %4028 = vmatpush3.xpose.msk.msra.mxu0 %vm1239_vm5, %v2514_v21 }
 0xc69   : > { %4037 = vmatprep.subr.mxu0 %v4445_v0  ;;  %4032 = vmatprep.subr.mxu1 %v4445_v0 }
 0xc6b   : > { %v2680_v44 = vpop.permute.xlu0 %2679  ;;  %4025 = vmatmul.mubr.msk.f32.vlgmr.msra.gmra.mxu1 %vm1239_vm5, %v2328_v38  ;;  %v2512_v45 = vpop.permute.xlu1 %2511 }
 0xc6c   : > { %4030 = vmatmul.mubr.msk.f32.vlgmr.msra.gmra.mxu0 %vm1239_vm5, %v2512_v45  ;;  %4034 = vmatprep.mubr.msk.f32.mxu1 %vm4446_vm0, %v4445_v0 }
 0xc6d   : > { %4038 = vmatpush3.xpose.msk.msra.mxu0 %vm1239_vm5, %v2680_v44  ;;  %4039 = vmatprep.mubr.msk.f32.mxu0 %vm4446_vm0, %v4445_v0 }
 0xc6e   : > { %4047 = vmatprep.subr.mxu0 %v4445_v0 }
 0xc6f   : > { %v2678_v37 = vpop.permute.xlu0 %2677  ;;  %v2597_v50 = vpop.permute.xlu1 %2596 }
 0xc70   : > { %4033 = vmatpush3.xpose.msk.msra.mxu1 %vm1239_vm5, %v2597_v50  ;;  %4040 = vmatmul.mubr.msk.f32.vlgmr.msra.gmra.mxu0 %vm1239_vm5, %v2678_v37 }
 0xc71   : > { %4042 = vmatprep.subr.mxu1 %v4445_v0  ;;  %4049 = vmatprep.mubr.msk.f32.mxu0 %vm4446_vm0, %v4445_v0 }
 0xc73   : > { %v2595_v49 = vpop.permute.xlu1 %2594 }
 0xc74   : > { %4035 = vmatmul.mubr.msk.f32.vlgmr.msra.gmra.mxu1 %vm1239_vm5, %v2595_v49  ;;  %v3729_v49 = vld [vmem:[%s5318_s10 + $0x28] sm:$0xff] }
 0xc75   : > { %4043 = vmatpush3.msra.mxu1 %v5103_v47  ;;  %4044 = vmatprep.mubr.msk.f32.mxu1 %vm4446_vm0, %v4445_v0 }
 0xc76   : > { %4052 = vmatprep.subr.mxu1 %v4445_v0 }
 0xc7c   : > { %v2508_v52 = vpop.permute.xlu0 %2507 }
 0xc7d   : > { %v2510_v54 = vmul.f32 %v2508_v52, %v4884_v8 }
 0xc80   : > { %v2426_v51 = vpop.permute.xlu1 %2425 }
 0xc81   : > { %v2428_v53 = vmul.f32 %v2426_v51, %v4884_v8 }
 0xc85   : > { %v2591_v56 = vpop.permute.xlu1 %2590 }
 0xc86   : > { %v2593_v48 = vmul.f32 %v2591_v56, %v4884_v8 }
 0xc8a   : > { %v2674_v2 = vpop.permute.xlu1 %2673 }
 0xc8b   : > { %v2676_v5 = vmul.f32 %v2674_v2, %v4884_v8 }
 0xd2b   : > { %v2502_v55 = vpop.f32.mrf.mxu1 }
 0xd2c   : > { %v2503_v57 = vadd.f32 %v2502_v55, %v2428_v53  ;;  %v2585_v58 = vpop.f32.mrf.mxu0  ;;  %v3728_v53 = vld [vmem:[%s5318_s10 + $0x20] sm:$0xff] }
 0xd2d   : > { %v2586_v59 = vadd.f32 %v2585_v58, %v2510_v54  ;;  %v4026_v60 = vpop.f32.mrf.mxu1 }
 0xd2e   : > { %v4031_v61 = vpop.f32.mrf.mxu0  ;;  %v2755_v62 = vsel %vm1239_vm5, %v2503_v57, -inf }
 0xd2f   : > { %2756 = vmax.xlane.f32.xlu0 %v2755_v62  ;;  %v2758_v63 = vsel %vm1239_vm5, %v2586_v59, -inf }
 0xd30   : > { %2759 = vmax.xlane.f32.xlu1 %v2758_v63  ;;  %v2751_v1 = vpop.f32.mrf.mxu0 }
 0xd31   : > { %v2752_v9 = vadd.f32 %v2751_v1, %v2676_v5 }
 0xd32   : > { %v4041_v3 = vpop.f32.mrf.mxu0 }
 0xd33   : > { %v2764_v11 = vsel %vm1239_vm5, %v2752_v9, -inf  ;;  %v3733_v3 = vld [vmem:[%s5319_s11 + $0x1] ss:$0 sm:$0xff] }
 0xd34   : > { %v2668_v4 = vpop.f32.mrf.mxu1 }
 0xd35   : > { %v2669_v6 = vadd.f32 %v2668_v4, %v2593_v48 }
 0xd36   : > { %v4036_v7 = vpop.f32.mrf.mxu1 }
 0xd37   : > { %v2761_v10 = vsel %vm1239_vm5, %v2669_v6, -inf }
 0xd38   : > { %2762 = vmax.xlane.f32.xlu0 %v2761_v10 }
 0xd3c   : > { %2765 = vmax.xlane.f32.xlu0 %v2764_v11 }
 0xd41   : > { %2873 = vrot.lane.b32.xlu1 %v5103_v47, %s4449_s22 }
 0xdb8   : > { %v2757_v12 = vpop.xlane.xlu0 %2756 }
 0xdb9   : > { %v2767_v13 = vsub.f32 %v2503_v57, %v2757_v12  ;;  %v2760_v14 = vpop.xlane.xlu1 %2759 }
 0xdba   : > { %v2768_v15 = vsub.f32 %v2586_v59, %v2760_v14  ;;  %v3742_v14 = vld [vmem:[%s5323_s15 + $0x38] sm:$0xff] }
 0xdbb   : > { %v2771_v16 = vmul.f32 1.442695, %v2767_v13 }
 0xdbc   : > { %v2773_v17 = vmul.f32 1.442695, %v2768_v15  ;;  %v3741_v15 = vld [vmem:[%s5323_s15 + $0x30] sm:$0xff] }
 0xdbd   : > { %4241 = vpow2.f32 %v2771_v16  ;;  %v2874_v8 = vpop.permute.xlu1 %2873  ;;  %v3739_v16 = vld [vmem:[%s5323_s15 + $0x20] sm:$0xff] }
 0xdbe   : > { %4243 = vpow2.f32 %v2773_v17  ;;  %4048 = vmatpush3.msra.mxu0 %v2874_v8  ;;  %v3753_v17 = vld [vmem:[%s5325_s17 + $0x78] sm:$0xff]  ;;  %v3752_v8 = vld [vmem:[%s5325_s17 + $0x70] sm:$0xff] }
 0xdbf   : > { %4057 = vmatprep.subr.mxu0 %v4445_v0 }
 0xdc1   : > { %v2763_v18 = vpop.xlane.xlu0 %2762 }
 0xdc2   : > { %v2769_v19 = vsub.f32 %v2669_v6, %v2763_v18  ;;  %v3751_v18 = vld [vmem:[%s5325_s17 + $0x68] sm:$0xff] }
 0xdc4   : > { %v2775_v20 = vmul.f32 1.442695, %v2769_v19  ;;  %v3750_v19 = vld [vmem:[%s5325_s17 + $0x60] sm:$0xff] }
 0xdc5   : > { %v2766_v22 = vpop.xlane.xlu0 %2765 }
 0xdc6   : > { %4245 = vpow2.f32 %v2775_v20  ;;  %v2770_v24 = vsub.f32 %v2752_v9, %v2766_v22  ;;  %v3749_v20 = vld [vmem:[%s5325_s17 + $0x58] sm:$0xff] }
 0xdc8   : > { %v2777_v25 = vmul.f32 1.442695, %v2770_v24 }
 0xdca   : > { %v4242_v26 = vpop.eup %4241  ;;  %4247 = vpow2.f32 %v2777_v25 }
 0xdcb   : > { %v4244_v27 = vpop.eup %4243  ;;  %v2779_v28 = vsel %vm1239_vm5, %v4242_v26, 0.0 }
 0xdcc   : > { %2780 = vadd.xlane.f32.xlu1 %v2779_v28  ;;  %v2782_v29 = vsel %vm1239_vm5, %v4244_v27, 0.0 }
 0xdcd   : > { %2783 = vadd.xlane.f32.xlu0 %v2782_v29  ;;  %v3738_v29 = vld [vmem:[%s5322_s14 + $0x1] ss:$0 sm:$0xff] }
 0xdd3   : > { %v4246_v31 = vpop.eup %4245 }
 0xdd4   : > { %v2785_v32 = vsel %vm1239_vm5, %v4246_v31, 0.0 }
 0xdd5   : > { %2786 = vadd.xlane.f32.xlu1 %v2785_v32 }
 0xdd7   : > { %v4248_v33 = vpop.eup %4247 }
 0xdd8   : > { %v2788_v23 = vsel %vm1239_vm5, %v4248_v33, 0.0 }
 0xdd9   : > { %2789 = vadd.xlane.f32.xlu0 %v2788_v23  ;;  %v3747_v23 = vld [vmem:[%s5325_s17 + $0x48] sm:$0xff] }
 0xde6   : > { %3025 = vrot.lane.b32.xlu1 %v5103_v47, %s5407_s26  ;;  %s5414_s26 = sld [smem:[#allocation21_spill]] }
 0xdec   : > { %p5418_p13 = scmp.ne.s32.totalorder %s5414_s26, 0 }
 0xdef   : > { %2949 = vrot.lane.b32.xlu0 %v5103_v47, %s5409_s21  ;;  %v3730_v47 = vld [vmem:[%s5318_s10 + $0x30] sm:$0xff]  ;;  %s5410_s21 = smov 8  }
 0xe55   : > { %v2781_v34 = vpop.xlane.xlu1 %2780 }
 0xe56   : > { %4249 = vrcp.f32 %v2781_v34  ;;  %v2784_v35 = vpop.xlane.xlu0 %2783  ;;  %v3746_v34 = vld [vmem:[%s5325_s17 + $0x40] sm:$0xff] }
 0xe57   : > { %4251 = vrcp.f32 %v2784_v35  ;;  %v3744_v35 = vld [vmem:[%s5324_s16 + $0x1] ss:$0 sm:$0xff] }
 0xe5e   : > { %v2787_v36 = vpop.xlane.xlu1 %2786 }
 0xe5f   : > { %4253 = vrcp.f32 %v2787_v36 }
 0xe62   : > { %v2790_v38 = vpop.xlane.xlu0 %2789  ;;  %v3026_v43 = vpop.permute.xlu1 %3025 }
 0xe63   : > { %v4250_v39 = vpop.eup %4249  ;;  %4255 = vrcp.f32 %v2790_v38 }
 0xe64   : > { %v4252_v40 = vpop.eup %4251  ;;  %v2795_v41 = vmul.f32 %v4250_v39, %v4242_v26 }
 0xe65   : > { %v2796_v42 = vmul.f32 %v4252_v40, %v4244_v27  ;;  %v3737_v27 = vld [vmem:[%s5321_s13 + $0x1] ss:$0 sm:$0xff] }
 0xe66   : > { %4045 = vmatmul.mubr.msk.f32.vlgmr.msra.gmra.mxu1 %vm1239_vm5, %v2795_v41  ;;  %v2950_v21 = vpop.permute.xlu0 %2949  ;;  %v3755_v41 = vld [vmem:[%s5326_s18 + $0x1] ss:$0 sm:$0xff] }
 0xe67   : > { %4050 = vmatmul.mubr.msk.f32.vlgmr.msra.gmra.mxu0 %vm1239_vm5, %v2796_v42  ;;  %4053 = vmatpush3.msra.mxu1 %v2950_v21 }
 0xe68   : > { %4058 = vmatpush3.msra.mxu0 %v3026_v43  ;;  %4054 = vmatprep.mubr.msk.f32.mxu1 %vm4446_vm0, %v4445_v0 }
 0xe69   : > { %4059 = vmatprep.mubr.msk.f32.mxu0 %vm4446_vm0, %v4445_v0  ;;  %4062 = vmatprep.subr.mxu1 %v4445_v0 }
 0xe6a   : > { %4073 = vmatprep.subr.mxu0 %v4445_v0 }
 0xe6c   : > { %v4254_v44 = vpop.eup %4253 }
 0xe6d   : > { %v2797_v45 = vmul.f32 %v4254_v44, %v4246_v31 }
 0xe6f   : > { %4055 = vmatmul.mubr.msk.f32.vlgmr.msra.gmra.mxu1 %vm1239_vm5, %v2797_v45 }
 0xe70   : > { %v4256_v37 = vpop.eup %4255  ;;  %4070 = vmatprep.mubr.msk.f32.mxu1 %vm4446_vm0, %v4445_v0  ;;  %4063 = vmatpush3.msra.mxu1 %v3731_v46 }
 0xe71   : > { %v2798_v50 = vmul.f32 %v4256_v37, %v4248_v33  ;;  %4064 = vmatprep.subr.mxu1 %v4445_v0  ;;  %v3748_v33 = vld [vmem:[%s5325_s17 + $0x50] sm:$0xff] }
 0xe72   : > { %4065 = vmatpush3.msra.mxu1 %v3730_v47 }
 0xe73   : > { %4060 = vmatmul.mubr.msk.f32.vlgmr.msra.gmra.mxu0 %vm1239_vm5, %v2798_v50  ;;  %4066 = vmatprep.subr.mxu1 %v4445_v0 }
 0xe74   : > { %4081 = vmatprep.mubr.msk.f32.mxu0 %vm4446_vm0, %v4445_v0  ;;  %4067 = vmatpush3.msra.mxu1 %v3729_v49 }
 0xe75   : > { %4068 = vmatprep.subr.mxu1 %v4445_v0  ;;  %4074 = vmatpush3.msra.mxu0 %v3742_v14 }
 0xe76   : > { %4069 = vmatpush3.msra.mxu1 %v3728_v53  ;;  %4075 = vmatprep.subr.mxu0 %v4445_v0  ;;  %v3444_v53 = vld [vmem:[%s5413_s27 + $0x8] sm:$0xff] }
 0xe77   : > { %4084 = vmatprep.subr.mxu1 %v4445_v0  ;;  %4076 = vmatpush3.msra.mxu0 %v3741_v15 }
 0xe78   : > { %4077 = vmatprep.subr.mxu0 %v4445_v0 }
 0xf26   : > { %v2868_v51 = vpop.f32.mrf.mxu1 }
 0xf27   : > { %v2945_v52 = vpop.f32.mrf.mxu0 }
 0xf28   : > { %v4046_v54 = vpop.f32.mrf.mxu1  ;;  %3102 = vrot.lane.b32.xlu1 %v2945_v52, %s5410_s21  ;;  %v3445_v52 = vld [vmem:[%s5413_s27 + $0x10] sm:$0xff]  ;;  %s3764_s21 = sshll.u32 %s4604_s5, 7  ;;  %s4462_s5 = smov [#allocation10]  }
 0xf29   : > { %v4051_v55 = vpop.f32.mrf.mxu0  ;;  %v3443_v54 = vld [vmem:[%s5413_s27] sm:$0xff]  ;;  %s5270_s25 = scalar_lea.hbm %s5417_s7, %s3764_s21  ;;  %s4371_s28 = sshll.u32 %s4462_s5, 4  ;;  %s4372_s28 = int_to_ptr.vmem [resolvable:$false] %s4371_s28 }
 0xf2a   : > { %s4373_s4 = scalar_lea.vmem %s4372_s28, 256 }
 0xf2f   : > { %v3021_v56 = vpop.f32.mrf.mxu1 }
 0xf30   : > { %3106 = vrot.lane.b32.xlu0 %v3021_v56, %s5411_s20  ;;  %s5416_s20 = sshll.u32 %s4717_s24, 3 }
 0xf31   : > { %v4056_v57 = vpop.f32.mrf.mxu1  ;;  %s776_s1 = scalar_lea.vmem [#allocation10], %s5416_s20 }
 0xf33   : > { %v3097_v58 = vpop.f32.mrf.mxu0 }
 0xf34   : > { %3110 = vrot.lane.b32.xlu1 %v3097_v58, %s5412_s29  ;;  %s3542_s29 = sshll.u32 %s776_s1, 4  ;;  %s3543_s29 = int_to_ptr.vmem [resolvable:$true] %s3542_s29 }
 0xf35   : > { %v4061_v59 = vpop.f32.mrf.mxu0  ;;  %p4374_p1 = scmp.lt.s32.totalorder %s3543_s29, %s4372_s28 }
 0xf36   : > { %v3759_v59 = vld [vmem:[%s5327_s19 + $0x1] ss:$0 sm:$0xff] }
 0xf9a   : > { %v3103_v60 = vpop.permute.xlu1 %3102 }
 0xf9b   : > { %v3113_v62 = vsel %vm1239_vm5, %v2868_v51, %v3103_v60  ;;  %v3446_v51 = vld [vmem:[%s5413_s27 + $0x18] sm:$0xff] }
 0xfa2   : > { %v3107_v61 = vpop.permute.xlu0 %3106 }
 0xfa3   : > { %v3114_v63 = vsel %vm1922_vm8, %v3113_v62, %v3107_v61  ;;  %v3760_v61 = vld [vmem:[%s5406_s2 + $0x1] ss:$0 sm:$0xff]  ;;  %s4367_s2 = scalar_lea.vmem %s3543_s29, 128 }
 0xfa4   : > { %p4368_p10 = scmp.ne.s32.totalorder %s3543_s29, %s4367_s2  ;;  %p4375_p9 = scmp.lt.s32.totalorder %s4373_s4, %s4367_s2 }
 0xfa6   : > { %v3111_v1 = vpop.permute.xlu1 %3110  ;;  %p4369_p0 = pnand %p4368_p10, %p5418_p13  ;;  %p4376_p6 = por %p4375_p9, %p4374_p1 }
 0xfa7   : > { %v3115_v2 = vsel %vm1924_vm9, %v3114_v63, %v3111_v1 }
 0xfa8   : > { %4071 = vmatmul.mubr.msk.f32.vlgmr.msra.gmra.mxu1 %vm1067_vm4, %v3115_v2  ;;  %p4370_p5 = pneg %p4369_p0 }
 0xfa9   : > { %4100 = vmatprep.mubr.msk.f32.mxu1 %vm4446_vm0, %v4445_v0  ;;  %4085 = vmatpush3.msra.mxu1 %v3753_v17 }
 0xfaa   : > { %4086 = vmatprep.subr.mxu1 %v4445_v0  ;;  %p4377_p3 = pnand %p4376_p6, %p4370_p5 }
 0xfab   : > { %4087 = vmatpush3.msra.mxu1 %v3752_v8 }
 0xfac   : > { %4088 = vmatprep.subr.mxu1 %v4445_v0 }
 0xfad   : > { %4089 = vmatpush3.msra.mxu1 %v3751_v18 }
 0xfae   : > { %4090 = vmatprep.subr.mxu1 %v4445_v0 }
 0xfaf   : > { %4091 = vmatpush3.msra.mxu1 %v3750_v19 }
 0xfb0   : > { %4092 = vmatprep.subr.mxu1 %v4445_v0 }
 0xfb1   : > { %4093 = vmatpush3.msra.mxu1 %v3749_v20 }
 0xfb2   : > { %4094 = vmatprep.subr.mxu1 %v4445_v0 }
 0xfb3   : > { %4095 = vmatpush3.msra.mxu1 %v3748_v33 }
 0xfb4   : > { %4096 = vmatprep.subr.mxu1 %v4445_v0 }
 0xfb5   : > { %4097 = vmatpush3.msra.mxu1 %v3747_v23 }
 0xfb6   : > { %4098 = vmatprep.subr.mxu1 %v4445_v0 }
 0xfb7   : > { %4099 = vmatpush3.msra.mxu1 %v3746_v34 }
0x1068   : > { %v3198_v48 = vpop.f32.mrf.mxu1 }
0x1069   : > { %v3199_v4 = vadd.f32 %v3733_v3, %v3198_v48 }
0x106a   : > { %v4072_v5 = vpop.f32.mrf.mxu1 }
0x106b   : > { %v3202_v6 = vadd.f32 %v3199_v4, %v5040_v30  ;;  %v3740_v30 = vld [vmem:[%s5323_s15 + $0x28] sm:$0xff] }
0x106c   : > { %4078 = vmatpush3.msra.mxu0 %v3740_v30 }
0x106d   : > { %v3207_v7 = vsel %vm1067_vm4, %v3202_v6, 0.0  ;;  %4079 = vmatprep.subr.mxu0 %v4445_v0 }
0x106e   : > { %3208 = vadd.xlane.f32.xlu0 %v3207_v7  ;;  %4080 = vmatpush3.msra.mxu0 %v3739_v16 }
0x106f   : > { %4103 = vmatprep.subr.mxu0 %v4445_v0 }
0x10f7   : > { %v3209_v9 = vpop.xlane.xlu0 %3208 }
0x10f8   : > { %v3210_v10 = vmul.f32 0.03125, %v3209_v9 }
0x10fa   : > { %v3211_v11 = vsub.f32 %v3202_v6, %v3210_v10 }
0x10fc   : > { %v3212_v12 = vmul.f32 %v3211_v11, %v3211_v11 }
0x10fe   : > { %v3213_v13 = vsel %vm1067_vm4, %v3212_v12, 0.0 }
0x10ff   : > { %3214 = vadd.xlane.f32.xlu1 %v3213_v13 }
0x1188   : > { %v3215_v22 = vpop.xlane.xlu1 %3214 }
0x1189   : > { %v3216_v24 = vmul.f32 0.03125, %v3215_v22 }
0x118b   : > { %v3217_v25 = vadd.f32 1e-05, %v3216_v24 }
0x118d   : > { %4257 = vrsqrt.f32 %v3217_v25 }
0x119a   : > { %v4258_v26 = vpop.eup %4257 }
0x119b   : > { %v3219_v28 = vmul.f32 %v4258_v26, %v3211_v11 }
0x119d   : > { %v3226_v31 = vmul.f32 %v3737_v27, %v3219_v28 }
0x119f   : > { %v3233_v32 = vadd.f32 %v3738_v29, %v3226_v31 }
0x11a1   : > { %4082 = vmatmul.mubr.msk.f32.vlgmr.msra.gmra.mxu0 %vm1067_vm4, %v3233_v32 }
0x11a2   : > { %4111 = vmatprep.mubr.msk.f32.mxu0 %vm4446_vm0, %v4445_v0  ;;  %4104 = vmatpush3.msra.mxu0 %v3446_v51 }
0x11a3   : > { %4105 = vmatprep.subr.mxu0 %v4445_v0 }
0x11a4   : > { %4106 = vmatpush3.msra.mxu0 %v3445_v52 }
0x11a5   : > { %4107 = vmatprep.subr.mxu0 %v4445_v0 }
0x11a6   : > { %4108 = vmatpush3.msra.mxu0 %v3444_v53 }
0x11a7   : > { %4109 = vmatprep.subr.mxu0 %v4445_v0  ;;  %v3761_v0 = vld [vmem:[%s5415_s3] ss:$0 sm:$0xff] }
0x11a8   : > { %4110 = vmatpush3.msra.mxu0 %v3443_v54 }
0x1261   : > { %v3316_v36 = vpop.f32.mrf.mxu0 }
0x1262   : > { %v3317_v38 = vadd.f32 %v3744_v35, %v3316_v36 }
0x1263   : > { %v4083_v39 = vpop.f32.mrf.mxu0 }
0x1264   : > { %v3320_v40 = vmax.f32 %v3317_v38, 0.0 }
0x1266   : > { %4101 = vmatmul.mubr.msk.f32.vlgmr.msra.gmra.mxu1 %vm885_vm3, %v3320_v40 }
0x1326   : > { %v3407_v42 = vpop.f32.mrf.mxu1 }
0x1327   : > { %v3408_v21 = vadd.f32 %v3755_v41, %v3407_v42 }
0x1328   : > { %v4102_v43 = vpop.f32.mrf.mxu1 }
0x1329   : > { %v3411_v44 = vadd.f32 %v3408_v21, %v3233_v32 }
0x132b   : > { %v3416_v45 = vsel %vm1067_vm4, %v3411_v44, 0.0 }
0x132c   : > { %3417 = vadd.xlane.f32.xlu0 %v3416_v45 }
0x13b5   : > { %v3418_v37 = vpop.xlane.xlu0 %3417 }
0x13b6   : > { %v3419_v50 = vmul.f32 0.03125, %v3418_v37 }
0x13b8   : > { %v3420_v46 = vsub.f32 %v3411_v44, %v3419_v50 }
0x13ba   : > { %v3421_v47 = vmul.f32 %v3420_v46, %v3420_v46 }
0x13bc   : > { %v3422_v49 = vsel %vm1067_vm4, %v3421_v47, 0.0 }
0x13bd   : > { %3423 = vadd.xlane.f32.xlu0 %v3422_v49 }
0x1446   : > { %v3424_v55 = vpop.xlane.xlu0 %3423 }
0x1447   : > { %v3425_v56 = vmul.f32 0.03125, %v3424_v55 }
0x1449   : > { %v3426_v57 = vadd.f32 1e-05, %v3425_v56 }
0x144b   : > { %4259 = vrsqrt.f32 %v3426_v57 }
0x1458   : > { %v4260_v58 = vpop.eup %4259 }
0x1459   : > { %v3428_v60 = vmul.f32 %v4260_v58, %v3420_v46 }
0x145b   : > { %v3435_v62 = vmul.f32 %v3759_v59, %v3428_v60 }
0x145d   : > { %v3442_v63 = vadd.f32 %v3760_v61, %v3435_v62 }
0x145f   : > { %4112 = vmatmul.mubr.msk.f32.vlgmr.msra.gmra.mxu0 %vm1067_vm4, %v3442_v63 }
0x151f   : > { %v3523_v1 = vpop.f32.mrf.mxu0 }
0x1520   : > { %v3524_v2 = vadd.f32 %v3761_v0, %v3523_v1 }
0x1521   : > { %v4113_v3 = vpop.f32.mrf.mxu0 }
0x1522   : > { %3527 = vst.msk [vmem:[%s776_s1] sm:$0xff] %vm1922_vm8, %v3524_v2 }
0x1523   : > { %4380 = shalt.err (!%p4377_p3)
}
0x1524   : > { %s4381_s1 = scalar_lea.hbm %s5270_s25, 128  ;;  %s4385_s3 = scalar_lea.hbm %s5417_s7, 256 }
0x1525   : > { %p4382_p8 = scmp.ne.s32.totalorder %s5270_s25, %s4381_s1  ;;  %p4386_p4 = scmp.lt.s32.totalorder %s5270_s25, %s5417_s7 }
0x1526   : > { %p4387_p7 = scmp.lt.s32.totalorder %s4385_s3, %s4381_s1 }
0x1527   : > { %p4383_p2 = pnand %p4382_p8, %p5418_p13 }
0x1528   : > { %p4388_p12 = por %p4387_p7, %p4386_p4 }
0x1529   : > { %p4384_p11 = pneg %p4383_p2 }
0x152b   : > { %p4389_p10 = pnand %p4388_p12, %p4384_p11 }
0x152d   : > { %4392 = shalt.err (!%p4389_p10)
}
0x152e   : > { %4128 = dma.vmem_to_hbm [thread:$0]  (%p5418_p13), %s3543_s29, 128, %s5270_s25, %s3529_s0  }
0x152f PF: > { %s5419_s2 = sld [smem:[#allocation15_spill]] }
0x1530   : > { %s5420_s22 = sld [smem:[#allocation18_spill]] }
0x1531   : > { %s5421_s5 = sld [smem:[#allocation17_spill]] }
0x1535   : > { %s3554_s28 = sand.u32 1, %s5419_s2  }
0x1536   : > { %p5422_p0 = scmp.ne.s32.totalorder %s5420_s22, 0  ;;  %s3555_s4 = scalar_lea.sflag [#allocation4], %s3554_s28 }
0x1537   : > { %p5423_p5 = scmp.ge.s32.totalorder %s5421_s5, 2 }
0x1539   : > { %p4145_p1 = pnand %p5423_p5, %p5422_p0 }
0x153b   : > { %p4146_p9 = pneg %p4145_p1 }
0x153d   : > { %4422 = dma.done.wait (%p4146_p9), %s3555_s4, 128  }
0x153e   : > { %4424 = vsyncadd (%p4146_p9), %s3555_s4, 4294967168  ;;  %s5424_s25 = sld [smem:[#allocation19_spill]]  ;;  %s5427_s4 = smov %s4431_s30 }
0x153f   : > { %s5425_s1 = sld [smem:[#allocation16_spill]] }
0x1540   : > { %s5426_s24 = sld [smem:[#allocation20_spill]] }
0x1544   : > { %p38_p6 = scmp.ge.s32.totalorder %s5424_s25, 4  }
0x1545   : > { %s5428_s30 = smov %s5425_s1 }
0x1546   :  { %40 = sbr.rel (!%p38_p6) target bundleno = 20 (0x14), region = 187 }
0x154b   :  { %3560 = vsyncpa [#allocation3], 1 }
0x154c   :  { %3562 = vsyncpa [#allocation3 + $0x1], 1 }
0x154d   :  { %3563 = vsyncpa [#allocation6], 1 }
0x154e   :  { %3564 = vsyncpa [#allocation9], 1 }
0x154f   :  { %3565 = vsyncpa [#allocation4], 1 }
0x1550   :  { %3567 = vsyncpa [#allocation4 + $0x1], 1 }

</bundles_post_ra>
